<compile_context>
chip_gen: v7x
topology: tpu7x:2x2x1
jax: 0.10.0
libtpu: 0.0.40
codegen_flags: <defaults>
</compile_context>

<pallas_src>
import functools

import numpy as np

import jax
import jax.numpy as jnp
from jax import lax
from jax.experimental import pallas as pl
from jax.experimental.pallas import tpu as pltpu


# ------------------------------- helpers -------------------------------------
def _tree_sum(xs):
    """Pairwise (tree) sum of a list of arrays."""
    xs = list(xs)
    while len(xs) > 1:
        nxt = [xs[i] + xs[i + 1] for i in range(0, len(xs) - 1, 2)]
        if len(xs) % 2:
            nxt.append(xs[-1])
        xs = nxt
    return xs[0]


def _make_tap_masks(H, W):
    """(9, 1, H*W) f32 validity masks for the 3x3 taps (pad=1 borders)."""
    hh, ww = np.meshgrid(np.arange(H), np.arange(W), indexing="ij")
    hh = hh.reshape(-1)
    ww = ww.reshape(-1)
    masks = np.zeros((9, 1, H * W), np.float32)
    for kh in range(3):
        for kw in range(3):
            dh, dw = kh - 1, kw - 1
            valid = ((hh + dh >= 0) & (hh + dh < H) &
                     (ww + dw >= 0) & (ww + dw < W))
            masks[kh * 3 + kw, 0, :] = valid.astype(np.float32)
    return jnp.asarray(masks)


# ----------------------------- Pallas kernel ---------------------------------
def _inverted_bottleneck_kernel(
    x_ref,      # (B, Cin, M)     M = H*W on the lane axis (lane-dense)
    w1_ref,     # (Cmid, Cin)     BN1-folded 1x1 weight (compute dtype)
    b1_ref,     # (Cmid, 1)       f32
    w2_ref,     # (9, Cmid, 1)    BN2-folded depthwise taps (kh*3+kw), f32
    b2_ref,     # (Cmid, 1)       f32
    w3_ref,     # (Cout, Cmid)    BN3-folded 1x1 weight (compute dtype)
    b3_ref,     # (Cout, 1)       f32
    mask_ref,   # (9, 1, M)       f32 border masks
    o_ref,      # (B, Cout, M)
    *, W: int,
):
    B = x_ref.shape[0]
    M = x_ref.shape[2]

    # Weights / masks: load once per grid step (shared by all images in block).
    w1 = w1_ref[...]
    b1 = b1_ref[...]
    b2 = b2_ref[...]
    w3 = w3_ref[...]
    b3 = b3_ref[...]
    taps = [w2_ref[k] for k in range(9)]      # each (Cmid, 1)
    masks = [mask_ref[k] for k in range(9)]   # each (1, M)

    for b in range(B):                         # static unroll (B is small)
        x = x_ref[b]                           # (Cin, M)
        xf = x.astype(jnp.float32)

        # ---- conv1 (1x1, BN folded) + bias + ReLU : MXU ----
        h1 = jnp.dot(w1, x.astype(w1.dtype),
                     preferred_element_type=jnp.float32)        # (Cmid, M)
        h1 = jnp.maximum(h1 + b1, 0.0)

        # ---- depthwise 3x3 (stride 1, pad 1): lane rolls + border masks ----
        # No jnp.pad / unaligned sublane slices; rolls go to the XLU.
        contribs = []
        for kh in range(3):
            for kw in range(3):
                k = kh * 3 + kw
                delta = (kh - 1) * W + (kw - 1)
                shift = (-delta) % M
                shifted = h1 if shift == 0 else pltpu.roll(h1, shift, 1)
                contribs.append(shifted * masks[k] * taps[k])
        acc = _tree_sum(contribs)                                # (Cmid, M)
        h2 = jnp.maximum(acc + b2, 0.0)

        # ---- conv3 (1x1, BN folded) + bias + residual + ReLU : MXU ----
        out = jnp.dot(w3, h2.astype(w3.dtype),
                      preferred_element_type=jnp.float32)        # (Cout, M)
        out = jnp.maximum(out + b3 + xf, 0.0)
        o_ref[b] = out.astype(o_ref.dtype)


# ------------------------------- wrapper --------------------------------------
def inverted_bottleneck(x, kparams, *, spatial_hw, batch_block=1,
                        compute_dtype=jnp.float32):
    """x: (N, Cin, H*W) float32, channels on sublanes, spatial on lanes.

    batch_block=1 keeps a 2-wide 'parallel' grid when N==2 (one image per
    TensorCore on v7x).  batch_block=N collapses to a single grid step, which
    is best on single-TC chips (v5e/v6e).
    """
    H, W = spatial_hw
    N, Cin, M = x.shape
    assert M == H * W
    assert N % batch_block == 0
    Cmid = kparams["w1"].shape[0]
    Cout = kparams["w3"].shape[0]
    assert Cout == Cin, "identity residual requires inplanes == planes"

    masks = _make_tap_masks(H, W)
    w1 = kparams["w1"].astype(compute_dtype)
    w3 = kparams["w3"].astype(compute_dtype)

    grid = (N // batch_block,)
    full = lambda shape: pl.BlockSpec(shape, lambda n, _s=len(shape): (0,) * _s)
    kernel = functools.partial(_inverted_bottleneck_kernel, W=W)

    return pl.pallas_call(
        kernel,
        out_shape=jax.ShapeDtypeStruct((N, Cout, M), x.dtype),
        grid_spec=pltpu.PrefetchScalarGridSpec(
            num_scalar_prefetch=0,
            grid=grid,
            in_specs=[
                pl.BlockSpec((batch_block, Cin, M), lambda n: (n, 0, 0)),
                full((Cmid, Cin)),
                full((Cmid, 1)),
                full((9, Cmid, 1)),
                full((Cmid, 1)),
                full((Cout, Cmid)),
                full((Cout, 1)),
                full((9, 1, M)),
            ],
            out_specs=pl.BlockSpec((batch_block, Cout, M),
                                   lambda n: (n, 0, 0)),
        ),
        compiler_params=pltpu.CompilerParams(
            dimension_semantics=("parallel",),
            vmem_limit_bytes=32 * 1024 * 1024,
        ),
    )(x, w1, kparams["b1"], kparams["w2"], kparams["b2"],
      w3, kparams["b3"], masks)


# ------------------------- parameter construction -----------------------------
def make_params(key, inplanes, planes, expansion=4, eps=1e-5):
    """PyTorch-shaped weights + eval-mode BN, folded into kernel params."""
    cmid = planes * expansion
    ks = jax.random.split(key, 6)

    w1_pt = jax.random.normal(ks[0], (cmid, inplanes, 1, 1), jnp.float32) * 0.1
    w2_pt = jax.random.normal(ks[1], (cmid, 1, 3, 3), jnp.float32) * 0.1
    w3_pt = jax.random.normal(ks[2], (planes, cmid, 1, 1), jnp.float32) * 0.1

    def bn(k, c):
        kg, kb, km, kv = jax.random.split(k, 4)
        gamma = 1.0 + 0.1 * jax.random.normal(kg, (c,), jnp.float32)
        beta = 0.1 * jax.random.normal(kb, (c,), jnp.float32)
        mean = 0.1 * jax.random.normal(km, (c,), jnp.float32)
        var = jnp.abs(jax.random.normal(kv, (c,), jnp.float32)) + 0.5
        scale = gamma / jnp.sqrt(var + eps)
        bias = beta - mean * scale
        return scale, bias

    s1, b1 = bn(ks[3], cmid)
    s2, b2 = bn(ks[4], cmid)
    s3, b3 = bn(ks[5], planes)

    # BN scales folded into the conv weights (review item: remove VPU muls).
    kparams = {
        "w1": w1_pt[:, :, 0, 0] * s1[:, None],                     # (Cmid, Cin)
        "b1": b1.reshape(cmid, 1),
        "w2": (w2_pt[:, 0, :, :].reshape(cmid, 9) * s2[:, None])
                 .T.reshape(9, cmid, 1),                           # (9, Cmid, 1)
        "b2": b2.reshape(cmid, 1),
        "w3": w3_pt[:, :, 0, 0] * s3[:, None],                     # (Cout, Cmid)
        "b3": b3.reshape(planes, 1),
    }
    ref_params = {
        "w1_pt": w1_pt, "w2_pt": w2_pt, "w3_pt": w3_pt,
        "s1": s1, "b1": b1, "s2": s2, "b2": b2, "s3": s3, "b3": b3,
    }
    return kparams, ref_params


# ------------------------- pure-JAX reference (NHWC) --------------------------
def reference(x_nhwc, p):
    cmid = p["w2_pt"].shape[0]
    dn = ("NHWC", "HWIO", "NHWC")
    w1 = jnp.transpose(p["w1_pt"], (2, 3, 1, 0))
    w2 = jnp.transpose(p["w2_pt"], (2, 3, 1, 0))
    w3 = jnp.transpose(p["w3_pt"], (2, 3, 1, 0))
    h = lax.conv_general_dilated(x_nhwc, w1, (1, 1), "SAME", dimension_numbers=dn)
    h = jnp.maximum(h * p["s1"] + p["b1"], 0.0)
    h = lax.conv_general_dilated(h, w2, (1, 1), "SAME",
                                 dimension_numbers=dn, feature_group_count=cmid)
    h = jnp.maximum(h * p["s2"] + p["b2"], 0.0)
    h = lax.conv_general_dilated(h, w3, (1, 1), "SAME", dimension_numbers=dn)
    h = h * p["s3"] + p["b3"]
    return jnp.maximum(h + x_nhwc, 0.0)


# ------------------------------------ main ------------------------------------
if __name__ == "__main__":
    # stride=1, dilation=1, downsample=None => inplanes == planes.
    N, H, W = 2, 16, 16
    inplanes = planes = 8            # Cmid = 32 ; H*W = 256 lanes (lane-dense)

    key = jax.random.PRNGKey(0)
    kx, kp = jax.random.split(key)
    x_nchw = jax.random.normal(kx, (N, inplanes, H, W), jnp.float32)

    kparams, ref_params = make_params(kp, inplanes, planes)

    # Kernel layout: (N, C, H*W).  Reference computed in NHWC, then matched.
    x_flat = x_nchw.reshape(N, inplanes, H * W)
    x_nhwc = jnp.transpose(x_nchw, (0, 2, 3, 1))
    ref = reference(x_nhwc, ref_params)
    ref_flat = jnp.transpose(ref, (0, 3, 1, 2)).reshape(N, planes, H * W)

    # 1) f32 path, 2-wide parallel grid (one image per TensorCore on v7x).
    out = jax.block_until_ready(
        inverted_bottleneck(x_flat, kparams, spatial_hw=(H, W), batch_block=1))
    assert out.shape == (N, planes, H * W)
    assert jnp.allclose(out, ref_flat, atol=5e-4, rtol=1e-3), \
        f"f32 max err {jnp.max(jnp.abs(out - ref_flat))}"

    # 2) Collapsed grid: all images in one step (best on single-TC v5e/v6e).
    out_c = jax.block_until_ready(
        inverted_bottleneck(x_flat, kparams, spatial_hw=(H, W), batch_block=N))
    assert jnp.allclose(out_c, ref_flat, atol=5e-4, rtol=1e-3), \
        f"collapsed-grid max err {jnp.max(jnp.abs(out_c - ref_flat))}"

    # 3) bf16 MXU inputs (f32 accumulation), looser tolerance.
    out_bf = jax.block_until_ready(
        inverted_bottleneck(x_flat, kparams, spatial_hw=(H, W),
                            batch_block=1, compute_dtype=jnp.bfloat16))
    assert jnp.allclose(out_bf, ref_flat, atol=3e-2, rtol=3e-2), \
        f"bf16 max err {jnp.max(jnp.abs(out_bf - ref_flat))}"

    print("KERNEL_OK")
</pallas_src>

<mosaic_0001>
module attributes {stable_mosaic.version = 11 : i64} {
  func.func @_inverted_bottleneck_kernel(%arg0: i32, %arg1: memref<1x8x256xf32, #tpu.memory_space<vmem>>, %arg2: memref<32x8xf32, #tpu.memory_space<vmem>>, %arg3: memref<32x1xf32, #tpu.memory_space<vmem>>, %arg4: memref<9x32x1xf32, #tpu.memory_space<vmem>>, %arg5: memref<32x1xf32, #tpu.memory_space<vmem>>, %arg6: memref<8x32xf32, #tpu.memory_space<vmem>>, %arg7: memref<8x1xf32, #tpu.memory_space<vmem>>, %arg8: memref<9x1x256xf32, #tpu.memory_space<vmem>>, %arg9: memref<1x8x256xf32, #tpu.memory_space<vmem>>) attributes {dimension_semantics = [#tpu.dimension_semantics<parallel>], iteration_bounds = array<i64: 2>, scalar_prefetch = 0 : i64, scratch_operands = 0 : i64, tpu.core_type = #tpu.core_type<tc>, window_params = [{transform_indices = @transform_0, window_bounds = array<i64: 1, 8, 256>}, {pipeline_mode = #tpu.pipeline_mode<synchronous>, transform_indices = @transform_1, window_bounds = array<i64: 32, 8>}, {pipeline_mode = #tpu.pipeline_mode<synchronous>, transform_indices = @transform_2, window_bounds = array<i64: 32, 1>}, {pipeline_mode = #tpu.pipeline_mode<synchronous>, transform_indices = @transform_3, window_bounds = array<i64: 9, 32, 1>}, {pipeline_mode = #tpu.pipeline_mode<synchronous>, transform_indices = @transform_4, window_bounds = array<i64: 32, 1>}, {pipeline_mode = #tpu.pipeline_mode<synchronous>, transform_indices = @transform_5, window_bounds = array<i64: 8, 32>}, {pipeline_mode = #tpu.pipeline_mode<synchronous>, transform_indices = @transform_6, window_bounds = array<i64: 8, 1>}, {pipeline_mode = #tpu.pipeline_mode<synchronous>, transform_indices = @transform_7, window_bounds = array<i64: 9, 1, 256>}, {transform_indices = @transform_8, window_bounds = array<i64: 1, 8, 256>}]} {
    %c0 = arith.constant 0 : index
    %c0_0 = arith.constant 0 : index
    %0 = vector.load %arg2[%c0, %c0_0] : memref<32x8xf32, #tpu.memory_space<vmem>>, vector<32x8xf32>
    %c0_1 = arith.constant 0 : index
    %c0_2 = arith.constant 0 : index
    %1 = vector.load %arg3[%c0_1, %c0_2] : memref<32x1xf32, #tpu.memory_space<vmem>>, vector<32x1xf32>
    %c0_3 = arith.constant 0 : index
    %c0_4 = arith.constant 0 : index
    %2 = vector.load %arg5[%c0_3, %c0_4] : memref<32x1xf32, #tpu.memory_space<vmem>>, vector<32x1xf32>
    %c0_5 = arith.constant 0 : index
    %c0_6 = arith.constant 0 : index
    %3 = vector.load %arg6[%c0_5, %c0_6] : memref<8x32xf32, #tpu.memory_space<vmem>>, vector<8x32xf32>
    %c0_7 = arith.constant 0 : index
    %c0_8 = arith.constant 0 : index
    %4 = vector.load %arg7[%c0_7, %c0_8] : memref<8x1xf32, #tpu.memory_space<vmem>>, vector<8x1xf32>
    %c0_9 = arith.constant 0 : index
    %c0_10 = arith.constant 0 : index
    %c0_11 = arith.constant 0 : index
    %5 = vector.load %arg4[%c0_9, %c0_10, %c0_11] : memref<9x32x1xf32, #tpu.memory_space<vmem>>, vector<1x32x1xf32>
    %6 = vector.shape_cast %5 : vector<1x32x1xf32> to vector<32x1xf32>
    %c1 = arith.constant 1 : index
    %c0_12 = arith.constant 0 : index
    %c0_13 = arith.constant 0 : index
    %7 = vector.load %arg4[%c1, %c0_12, %c0_13] : memref<9x32x1xf32, #tpu.memory_space<vmem>>, vector<1x32x1xf32>
    %8 = vector.shape_cast %7 : vector<1x32x1xf32> to vector<32x1xf32>
    %c2 = arith.constant 2 : index
    %c0_14 = arith.constant 0 : index
    %c0_15 = arith.constant 0 : index
    %9 = vector.load %arg4[%c2, %c0_14, %c0_15] : memref<9x32x1xf32, #tpu.memory_space<vmem>>, vector<1x32x1xf32>
    %10 = vector.shape_cast %9 : vector<1x32x1xf32> to vector<32x1xf32>
    %c3 = arith.constant 3 : index
    %c0_16 = arith.constant 0 : index
    %c0_17 = arith.constant 0 : index
    %11 = vector.load %arg4[%c3, %c0_16, %c0_17] : memref<9x32x1xf32, #tpu.memory_space<vmem>>, vector<1x32x1xf32>
    %12 = vector.shape_cast %11 : vector<1x32x1xf32> to vector<32x1xf32>
    %c4 = arith.constant 4 : index
    %c0_18 = arith.constant 0 : index
    %c0_19 = arith.constant 0 : index
    %13 = vector.load %arg4[%c4, %c0_18, %c0_19] : memref<9x32x1xf32, #tpu.memory_space<vmem>>, vector<1x32x1xf32>
    %14 = vector.shape_cast %13 : vector<1x32x1xf32> to vector<32x1xf32>
    %c5 = arith.constant 5 : index
    %c0_20 = arith.constant 0 : index
    %c0_21 = arith.constant 0 : index
    %15 = vector.load %arg4[%c5, %c0_20, %c0_21] : memref<9x32x1xf32, #tpu.memory_space<vmem>>, vector<1x32x1xf32>
    %16 = vector.shape_cast %15 : vector<1x32x1xf32> to vector<32x1xf32>
    %c6 = arith.constant 6 : index
    %c0_22 = arith.constant 0 : index
    %c0_23 = arith.constant 0 : index
    %17 = vector.load %arg4[%c6, %c0_22, %c0_23] : memref<9x32x1xf32, #tpu.memory_space<vmem>>, vector<1x32x1xf32>
    %18 = vector.shape_cast %17 : vector<1x32x1xf32> to vector<32x1xf32>
    %c7 = arith.constant 7 : index
    %c0_24 = arith.constant 0 : index
    %c0_25 = arith.constant 0 : index
    %19 = vector.load %arg4[%c7, %c0_24, %c0_25] : memref<9x32x1xf32, #tpu.memory_space<vmem>>, vector<1x32x1xf32>
    %20 = vector.shape_cast %19 : vector<1x32x1xf32> to vector<32x1xf32>
    %c8 = arith.constant 8 : index
    %c0_26 = arith.constant 0 : index
    %c0_27 = arith.constant 0 : index
    %21 = vector.load %arg4[%c8, %c0_26, %c0_27] : memref<9x32x1xf32, #tpu.memory_space<vmem>>, vector<1x32x1xf32>
    %22 = vector.shape_cast %21 : vector<1x32x1xf32> to vector<32x1xf32>
    %c0_28 = arith.constant 0 : index
    %c0_29 = arith.constant 0 : index
    %c0_30 = arith.constant 0 : index
    %23 = vector.load %arg8[%c0_28, %c0_29, %c0_30] : memref<9x1x256xf32, #tpu.memory_space<vmem>>, vector<1x1x256xf32>
    %24 = vector.shape_cast %23 : vector<1x1x256xf32> to vector<1x256xf32>
    %c1_31 = arith.constant 1 : index
    %c0_32 = arith.constant 0 : index
    %c0_33 = arith.constant 0 : index
    %25 = vector.load %arg8[%c1_31, %c0_32, %c0_33] : memref<9x1x256xf32, #tpu.memory_space<vmem>>, vector<1x1x256xf32>
    %26 = vector.shape_cast %25 : vector<1x1x256xf32> to vector<1x256xf32>
    %c2_34 = arith.constant 2 : index
    %c0_35 = arith.constant 0 : index
    %c0_36 = arith.constant 0 : index
    %27 = vector.load %arg8[%c2_34, %c0_35, %c0_36] : memref<9x1x256xf32, #tpu.memory_space<vmem>>, vector<1x1x256xf32>
    %28 = vector.shape_cast %27 : vector<1x1x256xf32> to vector<1x256xf32>
    %c3_37 = arith.constant 3 : index
    %c0_38 = arith.constant 0 : index
    %c0_39 = arith.constant 0 : index
    %29 = vector.load %arg8[%c3_37, %c0_38, %c0_39] : memref<9x1x256xf32, #tpu.memory_space<vmem>>, vector<1x1x256xf32>
    %30 = vector.shape_cast %29 : vector<1x1x256xf32> to vector<1x256xf32>
    %c4_40 = arith.constant 4 : index
    %c0_41 = arith.constant 0 : index
    %c0_42 = arith.constant 0 : index
    %31 = vector.load %arg8[%c4_40, %c0_41, %c0_42] : memref<9x1x256xf32, #tpu.memory_space<vmem>>, vector<1x1x256xf32>
    %32 = vector.shape_cast %31 : vector<1x1x256xf32> to vector<1x256xf32>
    %c5_43 = arith.constant 5 : index
    %c0_44 = arith.constant 0 : index
    %c0_45 = arith.constant 0 : index
    %33 = vector.load %arg8[%c5_43, %c0_44, %c0_45] : memref<9x1x256xf32, #tpu.memory_space<vmem>>, vector<1x1x256xf32>
    %34 = vector.shape_cast %33 : vector<1x1x256xf32> to vector<1x256xf32>
    %c6_46 = arith.constant 6 : index
    %c0_47 = arith.constant 0 : index
    %c0_48 = arith.constant 0 : index
    %35 = vector.load %arg8[%c6_46, %c0_47, %c0_48] : memref<9x1x256xf32, #tpu.memory_space<vmem>>, vector<1x1x256xf32>
    %36 = vector.shape_cast %35 : vector<1x1x256xf32> to vector<1x256xf32>
    %c7_49 = arith.constant 7 : index
    %c0_50 = arith.constant 0 : index
    %c0_51 = arith.constant 0 : index
    %37 = vector.load %arg8[%c7_49, %c0_50, %c0_51] : memref<9x1x256xf32, #tpu.memory_space<vmem>>, vector<1x1x256xf32>
    %38 = vector.shape_cast %37 : vector<1x1x256xf32> to vector<1x256xf32>
    %c8_52 = arith.constant 8 : index
    %c0_53 = arith.constant 0 : index
    %c0_54 = arith.constant 0 : index
    %39 = vector.load %arg8[%c8_52, %c0_53, %c0_54] : memref<9x1x256xf32, #tpu.memory_space<vmem>>, vector<1x1x256xf32>
    %40 = vector.shape_cast %39 : vector<1x1x256xf32> to vector<1x256xf32>
    %c0_55 = arith.constant 0 : index
    %c0_56 = arith.constant 0 : index
    %c0_57 = arith.constant 0 : index
    %41 = vector.load %arg1[%c0_55, %c0_56, %c0_57] : memref<1x8x256xf32, #tpu.memory_space<vmem>>, vector<1x8x256xf32>
    %42 = vector.shape_cast %41 : vector<1x8x256xf32> to vector<8x256xf32>
    %cst = arith.constant dense<0.000000e+00> : vector<32x256xf32>
    %43 = tpu.matmul %0, %42, %cst {dimension_numbers = #tpu.dot_dimension_numbers<[1], [0], [0], [1], [0, 0, 1, 1], [], []>} : vector<32x8xf32>, vector<8x256xf32>, vector<32x256xf32> -> vector<32x256xf32>
    %44 = vector.broadcast %1 : vector<32x1xf32> to vector<32x256xf32>
    %45 = arith.addf %43, %44 : vector<32x256xf32>
    %cst_58 = arith.constant 0.000000e+00 : f32
    %46 = vector.broadcast %cst_58 : f32 to vector<32x256xf32>
    %47 = arith.maximumf %45, %46 : vector<32x256xf32>
    %c17_i32 = arith.constant 17 : i32
    %48 = tpu.dynamic_rotate %47 by %c17_i32 dim 1 : vector<32x256xf32>, i32 -> vector<32x256xf32>
    %49 = vector.broadcast %24 : vector<1x256xf32> to vector<32x256xf32>
    %50 = arith.mulf %48, %49 : vector<32x256xf32>
    %51 = vector.broadcast %6 : vector<32x1xf32> to vector<32x256xf32>
    %52 = arith.mulf %50, %51 : vector<32x256xf32>
    %c16_i32 = arith.constant 16 : i32
    %53 = tpu.dynamic_rotate %47 by %c16_i32 dim 1 : vector<32x256xf32>, i32 -> vector<32x256xf32>
    %54 = vector.broadcast %26 : vector<1x256xf32> to vector<32x256xf32>
    %55 = arith.mulf %53, %54 : vector<32x256xf32>
    %56 = vector.broadcast %8 : vector<32x1xf32> to vector<32x256xf32>
    %57 = arith.mulf %55, %56 : vector<32x256xf32>
    %c15_i32 = arith.constant 15 : i32
    %58 = tpu.dynamic_rotate %47 by %c15_i32 dim 1 : vector<32x256xf32>, i32 -> vector<32x256xf32>
    %59 = vector.broadcast %28 : vector<1x256xf32> to vector<32x256xf32>
    %60 = arith.mulf %58, %59 : vector<32x256xf32>
    %61 = vector.broadcast %10 : vector<32x1xf32> to vector<32x256xf32>
    %62 = arith.mulf %60, %61 : vector<32x256xf32>
    %c1_i32 = arith.constant 1 : i32
    %63 = tpu.dynamic_rotate %47 by %c1_i32 dim 1 : vector<32x256xf32>, i32 -> vector<32x256xf32>
    %64 = vector.broadcast %30 : vector<1x256xf32> to vector<32x256xf32>
    %65 = arith.mulf %63, %64 : vector<32x256xf32>
    %66 = vector.broadcast %12 : vector<32x1xf32> to vector<32x256xf32>
    %67 = arith.mulf %65, %66 : vector<32x256xf32>
    %68 = vector.broadcast %32 : vector<1x256xf32> to vector<32x256xf32>
    %69 = arith.mulf %47, %68 : vector<32x256xf32>
    %70 = vector.broadcast %14 : vector<32x1xf32> to vector<32x256xf32>
    %71 = arith.mulf %69, %70 : vector<32x256xf32>
    %c255_i32 = arith.constant 255 : i32
    %72 = tpu.dynamic_rotate %47 by %c255_i32 dim 1 : vector<32x256xf32>, i32 -> vector<32x256xf32>
    %73 = vector.broadcast %34 : vector<1x256xf32> to vector<32x256xf32>
    %74 = arith.mulf %72, %73 : vector<32x256xf32>
    %75 = vector.broadcast %16 : vector<32x1xf32> to vector<32x256xf32>
    %76 = arith.mulf %74, %75 : vector<32x256xf32>
    %c241_i32 = arith.constant 241 : i32
    %77 = tpu.dynamic_rotate %47 by %c241_i32 dim 1 : vector<32x256xf32>, i32 -> vector<32x256xf32>
    %78 = vector.broadcast %36 : vector<1x256xf32> to vector<32x256xf32>
    %79 = arith.mulf %77, %78 : vector<32x256xf32>
    %80 = vector.broadcast %18 : vector<32x1xf32> to vector<32x256xf32>
    %81 = arith.mulf %79, %80 : vector<32x256xf32>
    %c240_i32 = arith.constant 240 : i32
    %82 = tpu.dynamic_rotate %47 by %c240_i32 dim 1 : vector<32x256xf32>, i32 -> vector<32x256xf32>
    %83 = vector.broadcast %38 : vector<1x256xf32> to vector<32x256xf32>
    %84 = arith.mulf %82, %83 : vector<32x256xf32>
    %85 = vector.broadcast %20 : vector<32x1xf32> to vector<32x256xf32>
    %86 = arith.mulf %84, %85 : vector<32x256xf32>
    %c239_i32 = arith.constant 239 : i32
    %87 = tpu.dynamic_rotate %47 by %c239_i32 dim 1 : vector<32x256xf32>, i32 -> vector<32x256xf32>
    %88 = vector.broadcast %40 : vector<1x256xf32> to vector<32x256xf32>
    %89 = arith.mulf %87, %88 : vector<32x256xf32>
    %90 = vector.broadcast %22 : vector<32x1xf32> to vector<32x256xf32>
    %91 = arith.mulf %89, %90 : vector<32x256xf32>
    %92 = arith.addf %52, %57 : vector<32x256xf32>
    %93 = arith.addf %62, %67 : vector<32x256xf32>
    %94 = arith.addf %71, %76 : vector<32x256xf32>
    %95 = arith.addf %81, %86 : vector<32x256xf32>
    %96 = arith.addf %92, %93 : vector<32x256xf32>
    %97 = arith.addf %94, %95 : vector<32x256xf32>
    %98 = arith.addf %96, %97 : vector<32x256xf32>
    %99 = arith.addf %98, %91 : vector<32x256xf32>
    %100 = vector.broadcast %2 : vector<32x1xf32> to vector<32x256xf32>
    %101 = arith.addf %99, %100 : vector<32x256xf32>
    %cst_59 = arith.constant 0.000000e+00 : f32
    %102 = vector.broadcast %cst_59 : f32 to vector<32x256xf32>
    %103 = arith.maximumf %101, %102 : vector<32x256xf32>
    %cst_60 = arith.constant dense<0.000000e+00> : vector<8x256xf32>
    %104 = tpu.matmul %3, %103, %cst_60 {dimension_numbers = #tpu.dot_dimension_numbers<[1], [0], [0], [1], [0, 0, 1, 1], [], []>} : vector<8x32xf32>, vector<32x256xf32>, vector<8x256xf32> -> vector<8x256xf32>
    %105 = vector.broadcast %4 : vector<8x1xf32> to vector<8x256xf32>
    %106 = arith.addf %104, %105 : vector<8x256xf32>
    %107 = arith.addf %106, %42 : vector<8x256xf32>
    %cst_61 = arith.constant 0.000000e+00 : f32
    %108 = vector.broadcast %cst_61 : f32 to vector<8x256xf32>
    %109 = arith.maximumf %107, %108 : vector<8x256xf32>
    %c0_62 = arith.constant 0 : index
    %c0_63 = arith.constant 0 : index
    %c0_64 = arith.constant 0 : index
    %110 = vector.load %arg9[%c0_62, %c0_63, %c0_64] : memref<1x8x256xf32, #tpu.memory_space<vmem>>, vector<1x8x256xf32>
    %111 = vector.shape_cast %110 : vector<1x8x256xf32> to vector<8x256xf32>
    %112 = vector.shape_cast %109 : vector<8x256xf32> to vector<1x8x256xf32>
    tpu.vector_store %arg9[%c0_62, %c0_63, %c0_64], %112 {strides = array<i32>} : memref<1x8x256xf32, #tpu.memory_space<vmem>>, vector<1x8x256xf32>,
    return
  }
  func.func @transform_0(%arg0: i32) -> (i32, i32, i32) {
    %c0_i32 = arith.constant 0 : i32
    %c0_i32_0 = arith.constant 0 : i32
    %c0_i32_1 = arith.constant 0 : i32
    return %arg0, %c0_i32, %c0_i32_0 : i32, i32, i32
  }
  func.func @transform_1(%arg0: i32) -> (i32, i32) {
    %c0_i32 = arith.constant 0 : i32
    %c0_i32_0 = arith.constant 0 : i32
    %c0_i32_1 = arith.constant 0 : i32
    return %c0_i32, %c0_i32_0 : i32, i32
  }
  func.func @transform_2(%arg0: i32) -> (i32, i32) {
    %c0_i32 = arith.constant 0 : i32
    %c0_i32_0 = arith.constant 0 : i32
    %c0_i32_1 = arith.constant 0 : i32
    return %c0_i32, %c0_i32_0 : i32, i32
  }
  func.func @transform_3(%arg0: i32) -> (i32, i32, i32) {
    %c0_i32 = arith.constant 0 : i32
    %c0_i32_0 = arith.constant 0 : i32
    %c0_i32_1 = arith.constant 0 : i32
    %c0_i32_2 = arith.constant 0 : i32
    return %c0_i32, %c0_i32_0, %c0_i32_1 : i32, i32, i32
  }
  func.func @transform_4(%arg0: i32) -> (i32, i32) {
    %c0_i32 = arith.constant 0 : i32
    %c0_i32_0 = arith.constant 0 : i32
    %c0_i32_1 = arith.constant 0 : i32
    return %c0_i32, %c0_i32_0 : i32, i32
  }
  func.func @transform_5(%arg0: i32) -> (i32, i32) {
    %c0_i32 = arith.constant 0 : i32
    %c0_i32_0 = arith.constant 0 : i32
    %c0_i32_1 = arith.constant 0 : i32
    return %c0_i32, %c0_i32_0 : i32, i32
  }
  func.func @transform_6(%arg0: i32) -> (i32, i32) {
    %c0_i32 = arith.constant 0 : i32
    %c0_i32_0 = arith.constant 0 : i32
    %c0_i32_1 = arith.constant 0 : i32
    return %c0_i32, %c0_i32_0 : i32, i32
  }
  func.func @transform_7(%arg0: i32) -> (i32, i32, i32) {
    %c0_i32 = arith.constant 0 : i32
    %c0_i32_0 = arith.constant 0 : i32
    %c0_i32_1 = arith.constant 0 : i32
    %c0_i32_2 = arith.constant 0 : i32
    return %c0_i32, %c0_i32_0, %c0_i32_1 : i32, i32, i32
  }
  func.func @transform_8(%arg0: i32) -> (i32, i32, i32) {
    %c0_i32 = arith.constant 0 : i32
    %c0_i32_0 = arith.constant 0 : i32
    %c0_i32_1 = arith.constant 0 : i32
    return %arg0, %c0_i32, %c0_i32_0 : i32, i32, i32
  }
}

</mosaic_0001>

<bundles_post_ra>
// kernel: tpu_custom_call.1
= control target key start
LH: loop header
LB: loop body
LE: loop exit
PB: predicated region body
PF: predicated region fallthrough
CT: control target
= control target key end

     0   :  { %13 = vsyncpa [#allocation3], 0  ;;  %s2628_s0 = inlined_call_operand.vmem [shape: f32[2,8,256], index: 0, kind: input, shape index: {}]   ;;  %s2629_s1 = inlined_call_operand.vmem [shape: f32[32,8], index: 1, kind: input, shape index: {}]   ;;  %s2630_s2 = inlined_call_operand.vmem [shape: f32[32,1], index: 2, kind: input, shape index: {}]   ;;  %s2631_s3 = inlined_call_operand.vmem [shape: f32[9,32,1], index: 3, kind: input, shape index: {}]   ;;  %s2632_s4 = inlined_call_operand.vmem [shape: f32[32,1], index: 4, kind: input, shape index: {}]   ;;  %s2633_s5 = inlined_call_operand.vmem [shape: f32[8,32], index: 5, kind: input, shape index: {}]   ;;  %s2634_s6 = inlined_call_operand.vmem [shape: f32[8,1], index: 6, kind: input, shape index: {}]   ;;  %s2635_s7 = inlined_call_operand.vmem [shape: f32[9,1,256], index: 7, kind: input, shape index: {}]   ;;  %s2636_s8 = inlined_call_operand.hbm [shape: f32[2,8,256], index: 8, kind: output, shape index: {}]  }
   0x1   :  { %15 = vsyncpa [#allocation3 + $0x1], 0  ;;  %s1636_s27 = smov 0   ;;  %s1638_s28 = smov 0  }
   0x2   :  { %s1640_s29 = smov 0   ;;  %s1642_s30 = smov 0  }
   0x3 LB: > { %s1657_s9 = sadd.s32 4294967295, %s1578_s30   ;;  %s1396_s10 = sadd.s32 4294967294, %s1578_s30   ;;  %s1578_s30 = sphi %s1642_s30, %s2721_s30   ;;  %s1574_s29 = sphi %s1640_s29, %s2720_s29   ;;  %s1570_s28 = sphi %s1638_s28, %s2719_s28   ;;  %s1566_s27 = sphi %s1636_s27, %s2718_s27  }
   0x4   : > { %s1661_s11 = sadd.s32 1, %s1578_s30   ;;  %s201_s12 = sadd.s32 1, %s1574_s29 }
   0x5   : > { %s198_s13 = ssub.s32 %s1578_s30, %s1661_s11  ;;  %p211_p0 = scmp.ne.s32.totalorder %s1574_s29, %s1570_s28 }
   0x6   : > { %p199_p1 = scmp.eq.s32.totalorder %s198_s13, 0  ;;  %p212_p2 = scmp.eq.s32.totalorder %s1657_s9, 1 }
   0x7   : > { %p217_p3 = scmp.ne.s32.totalorder %s1570_s28, %s1566_s27  ;;  %p218_p4 = scmp.eq.s32.totalorder %s1396_s10, 1 }
   0x8   : > { %s1672_s14 = scalar_select %p199_p1, %s1574_s29, %s201_s12  }
   0x9   : > { %p1674_p5 = por %p212_p2, %p211_p0  ;;  %p1678_p6 = por %p218_p4, %p217_p3 }
   0xa   : > { %p1399_p7 = scmp.ge.s32.totalorder %s1578_s30, 1  ;;  %p265_p8 = scmp.lt.s32.totalorder %s1578_s30, 3 }
   0xc   : > { %p266_p9 = pnand %p1399_p7, %p265_p8 }
   0xe   : > { %269 = sbr.rel (%p266_p9) target bundleno = 749 (0x2ed), region = 52 }
  0x15   : > { %p299_p10 = scmp.lt.s32.totalorder %s1657_s9, 1  ;;  %v308_v0 = vld [vmem:[%s2630_s2] sm:$0xff]  ;;  %v1580_v1 = vmov 0.0   ;;  %v1581_v2 = vmov 0   ;;  %v309_v3 = vld [vmem:[%s2630_s2 + $0x8] sm:$0xff]  ;;  %v310_v4 = vld [vmem:[%s2630_s2 + $0x10] sm:$0xff] }
  0x16   : > { %478 = vmatprep.mubr.f32.mxu0 %v1580_v1  ;;  %1512 = vset.pattern.permute.xlu0 %v1581_v2  ;;  %v304_v7 = vld [vmem:[%s2629_s1] sm:$0xff]  ;;  %vm401_vm0 = vcmask 64512   ;;  %v311_v9 = vld [vmem:[%s2630_s2 + $0x18] sm:$0xff]  ;;  %v305_v10 = vld [vmem:[%s2629_s1 + $0x8] sm:$0xff]  ;;  %s1582_s17 = smov 17   ;;  %s1583_s20 = smov 16  }
  0x17   : > { %s300_s19 = scalar_select %p299_p10, %s1657_s9, 1  ;;  %383 = vperm.xlu0 %1512, %v308_v0   ;;  %1513 = vset.pattern.permute.xlu1 %v1581_v2  ;;  %v318_v8 = vld [vmem:[%s2631_s3] sm:$0xff]  ;;  %v319_v12 = vld [vmem:[%s2631_s3 + $0x8] sm:$0xff]  ;;  %v306_v13 = vld [vmem:[%s2629_s1 + $0x10] sm:$0xff]  ;;  %vm1241_vm9 = vcmask 261120  }
  0x18   : > { %1309 = vmatprep.mubr.f32.mxu1 %v1580_v1  ;;  %393 = vperm.xlu1 %1513, %v310_v4   ;;  %v1403_v11 = vld [vmem:[%s2631_s3 + $0x20] sm:$0xff]  ;;  %v1404_v15 = vld [vmem:[%s2631_s3 + $0x28] sm:$0xff]  ;;  %v307_v16 = vld [vmem:[%s2629_s1 + $0x18] sm:$0xff]  ;;  %s1584_s21 = smov 15   ;;  %s1586_s23 = smov 127  }
  0x19   : > { %s1453_s22 = sshll.u32 %s300_s19, 4  ;;  %v1407_v14 = vld [vmem:[%s2631_s3 + $0x40] sm:$0xff]  ;;  %v1408_v18 = vld [vmem:[%s2631_s3 + $0x48] sm:$0xff]  ;;  %v320_v27 = vld [vmem:[%s2631_s3 + $0x10] sm:$0xff]  ;;  %s1587_s24 = smov 113  }
  0x1a   : > { %s1695_s25 = scalar_lea.vmem %s2628_s0, %s1453_s22  ;;  %v1411_v17 = vld [vmem:[%s2631_s3 + $0x60] sm:$0xff]  ;;  %v1412_v20 = vld [vmem:[%s2631_s3 + $0x68] sm:$0xff]  ;;  %v1405_v29 = vld [vmem:[%s2631_s3 + $0x30] sm:$0xff]  ;;  %s1585_s22 = smov 1  }
  0x1b   : > { %v380_v5 = vld [vmem:[%s1695_s25 + $0x8] sm:$0xff]  ;;  %v379_v6 = vld [vmem:[%s1695_s25] sm:$0xff]  ;;  %388 = vperm.xlu0 %1512, %v309_v3   ;;  %v321_v30 = vld [vmem:[%s2631_s3 + $0x18] sm:$0xff]  ;;  %s1588_s26 = smov 112   ;;  %s1589_s10 = smov 111  }
  0x1c   : > { %414 = vmatprep.subr.mxu0 %v380_v5  ;;  %398 = vperm.xlu1 %1513, %v311_v9   ;;  %v1415_v19 = vld [vmem:[%s2631_s3 + $0x80] sm:$0xff]  ;;  %v1416_v22 = vld [vmem:[%s2631_s3 + $0x88] sm:$0xff]  ;;  %v1409_v31 = vld [vmem:[%s2631_s3 + $0x50] sm:$0xff]  ;;  %v2637_v9 = vlaneseq  ;;  %s296_s12 = sand.u32 1, %s1570_s28  }
  0x1d   : > { %415 = vmatpush1.msra.mxu0 %v379_v6  ;;  %v1419_v21 = vld [vmem:[%s2631_s3 + $0xa0] sm:$0xff]  ;;  %v1420_v24 = vld [vmem:[%s2631_s3 + $0xa8] sm:$0xff]  ;;  %v1406_v32 = vld [vmem:[%s2631_s3 + $0x38] sm:$0xff]  ;;  %s1400_s13 = sshll.u32 %s296_s12, 4 }
  0x1e   : > { %1443 = vmatmul.mubr.msk.f32.vlgmr.msra.gmra.mrb[0].mxu0 %vm401_vm0, %v304_v7  ;;  %v1423_v23 = vld [vmem:[%s2631_s3 + $0xc0] sm:$0xff]  ;;  %v1424_v26 = vld [vmem:[%s2631_s3 + $0xc8] sm:$0xff]  ;;  %v1413_v33 = vld [vmem:[%s2631_s3 + $0x70] sm:$0xff]  ;;  %s298_s18 = scalar_lea.vmem [#allocation2], %s1400_s13 }
  0x1f   : > { %484 = vmatprep.mubr.f32.mxu0 %v1580_v1  ;;  %559 = vperm.xlu0 %1512, %v318_v8   ;;  %v1427_v25 = vld [vmem:[%s2631_s3 + $0xe0] sm:$0xff]  ;;  %v1428_v28 = vld [vmem:[%s2631_s3 + $0xe8] sm:$0xff]  ;;  %v1410_v34 = vld [vmem:[%s2631_s3 + $0x58] sm:$0xff]  ;;  %s1337_s19 = sshll.u32 %s298_s18, 4  ;;  %s2588_s19 = int_to_ptr.vmem [resolvable:$true] %s1337_s19 }
  0x20   : > { %564 = vperm.xlu1 %1513, %v319_v12   ;;  %v1417_v35 = vld [vmem:[%s2631_s3 + $0x90] sm:$0xff]  ;;  %v1414_v36 = vld [vmem:[%s2631_s3 + $0x78] sm:$0xff]  ;;  %v1431_v43 = vld [vmem:[%s2631_s3 + $0x100] sm:$0xff] }
  0x21   : > { %v1421_v37 = vld [vmem:[%s2631_s3 + $0xb0] sm:$0xff]  ;;  %v1418_v38 = vld [vmem:[%s2631_s3 + $0x98] sm:$0xff]  ;;  %v1432_v46 = vld [vmem:[%s2631_s3 + $0x108] sm:$0xff] }
  0x22   : > { %1444 = vmatmul.mubr.msk.f32.gmra.mrb[2].mxu0 %vm401_vm0, %v305_v10  ;;  %v1425_v39 = vld [vmem:[%s2631_s3 + $0xd0] sm:$0xff]  ;;  %v1422_v40 = vld [vmem:[%s2631_s3 + $0xb8] sm:$0xff]  ;;  %v312_v47 = vld [vmem:[%s2632_s4] sm:$0xff] }
  0x23   : > { %490 = vmatprep.mubr.f32.mxu0 %v1580_v1  ;;  %631 = vperm.xlu0 %1512, %v1403_v11   ;;  %v1429_v41 = vld [vmem:[%s2631_s3 + $0xf0] sm:$0xff]  ;;  %v1426_v42 = vld [vmem:[%s2631_s3 + $0xd8] sm:$0xff]  ;;  %v313_v49 = vld [vmem:[%s2632_s4 + $0x8] sm:$0xff] }
  0x24   : > { %636 = vperm.xlu1 %1513, %v1404_v15   ;;  %v1430_v44 = vld [vmem:[%s2631_s3 + $0xf8] sm:$0xff]  ;;  %v1433_v45 = vld [vmem:[%s2631_s3 + $0x110] sm:$0xff] }
  0x25   : > { %v1434_v48 = vld [vmem:[%s2631_s3 + $0x118] sm:$0xff] }
  0x26   : > { %1445 = vmatmul.mubr.msk.f32.gmra.mrb[4].mxu0 %vm401_vm0, %v306_v13 }
  0x27   : > { %703 = vperm.xlu0 %1512, %v1407_v14   ;;  %496 = vmatprep.mubr.f32.mxu0 %v1580_v1 }
  0x28   : > { %708 = vperm.xlu1 %1513, %v1408_v18  }
  0x2a   : > { %1446 = vmatmul.mubr.msk.f32.gmra.mrb[6].mxu0 %vm401_vm0, %v307_v16  ;;  %v540_v16 = vshrl.u32 %v2637_v9, 7 }
  0x2b   : > { %775 = vperm.xlu0 %1512, %v1411_v17  }
  0x2c   : > { %780 = vperm.xlu1 %1513, %v1412_v20  }
  0x2f   : > { %822 = vperm.xlu0 %1512, %v1415_v19  }
  0x30   : > { %827 = vperm.xlu1 %1513, %v1416_v22   ;;  %v1892_v22 = vsub.s32 0, %v540_v16 }
  0x33   : > { %894 = vperm.xlu0 %1512, %v1419_v21  }
  0x34   : > { %899 = vperm.xlu1 %1513, %v1420_v24  }
  0x37   : > { %966 = vperm.xlu0 %1512, %v1423_v23  }
  0x38   : > { %971 = vperm.xlu1 %1513, %v1424_v26   ;;  %v1438_v26 = vld [vmem:[%s2635_s7 + $0x8] sm:$0x3] }
  0x3b   : > { %1038 = vperm.xlu0 %1512, %v1427_v25   ;;  %v1896_v25 = vsub.s32 1, %v540_v16 }
  0x3c   : > { %1043 = vperm.xlu1 %1513, %v1428_v28  }
  0x3f   : > { %569 = vperm.xlu0 %1512, %v320_v27  }
  0x40   : > { %574 = vperm.xlu1 %1513, %v321_v30  }
  0x43   : > { %641 = vperm.xlu0 %1512, %v1405_v29  }
  0x44   : > { %646 = vperm.xlu1 %1513, %v1406_v32  }
  0x47   : > { %713 = vperm.xlu0 %1512, %v1409_v31   ;;  %v1908_v31 = vrot.slane %v1438_v26, %v1892_v22 }
  0x48   : > { %718 = vperm.xlu1 %1513, %v1410_v34  }
  0x4b   : > { %785 = vperm.xlu0 %1512, %v1413_v33  }
  0x4c   : > { %790 = vperm.xlu1 %1513, %v1414_v36  }
  0x4f   : > { %832 = vperm.xlu0 %1512, %v1417_v35   ;;  %v1915_v35 = vrot.slane %v1438_v26, %v1896_v25 }
  0x50   : > { %837 = vperm.xlu1 %1513, %v1418_v38  }
  0x53   : > { %904 = vperm.xlu0 %1512, %v1421_v37  }
  0x54   : > { %909 = vperm.xlu1 %1513, %v1422_v40  }
  0x57   : > { %976 = vperm.xlu0 %1512, %v1425_v39  }
  0x58   : > { %981 = vperm.xlu1 %1513, %v1426_v42  }
  0x5b   : > { %1048 = vperm.xlu0 %1512, %v1429_v41  }
  0x5c   : > { %1053 = vperm.xlu1 %1513, %v1430_v44  }
  0x5f   : > { %1110 = vperm.xlu0 %1512, %v1431_v43  }
  0x60   : > { %1115 = vperm.xlu1 %1513, %v1432_v46  }
  0x63   : > { %1120 = vperm.xlu0 %1512, %v1433_v45  }
  0x64   : > { %1125 = vperm.xlu1 %1513, %v1434_v48  }
  0x67   : > { %1202 = vperm.xlu0 %1512, %v312_v47  }
  0x68   : > { %1207 = vperm.xlu1 %1513, %v313_v49  }
  0x96   : > { %v1835_v50 = vpop.permute.xlu0 %383 }
  0x97   : > { %v394_v51 = vpop.permute.xlu1 %393 }
  0x9a   : > { %v1837_v52 = vpop.permute.xlu0 %388 }
  0x9b   : > { %v399_v53 = vpop.permute.xlu1 %398 }
  0x9e   : > { %v1839_v54 = vpop.permute.xlu0 %559 }
  0x9f   : > { %v1841_v55 = vpop.permute.xlu1 %564 }
  0xa2   : > { %v1843_v56 = vpop.permute.xlu0 %631 }
  0xa3   : > { %v1845_v57 = vpop.permute.xlu1 %636 }
  0xa6   : > { %v1847_v58 = vpop.permute.xlu0 %703 }
  0xa7   : > { %v1849_v59 = vpop.permute.xlu1 %708 }
  0xaa   : > { %v1851_v60 = vpop.permute.xlu0 %775 }
  0xab   : > { %v1853_v61 = vpop.permute.xlu1 %780 }
  0xae   : > { %v1855_v62 = vpop.permute.xlu0 %822 }
  0xaf   : > { %v1857_v63 = vpop.permute.xlu1 %827 }
  0xb2   : > { %v1859_v0 = vpop.permute.xlu0 %894 }
  0xb3   : > { %v1861_v1 = vpop.permute.xlu1 %899 }
  0xb6   : > { %v1863_v2 = vpop.permute.xlu0 %966 }
  0xb7   : > { %v1865_v3 = vpop.permute.xlu1 %971 }
  0xba   : > { %v1867_v4 = vpop.permute.xlu0 %1038 }
  0xbb   : > { %v1869_v5 = vpop.permute.xlu1 %1043 }
  0xbe   : > { %v1871_v6 = vpop.permute.xlu0 %569 }
  0xbf   : > { %2665 = vst [vmem:[#allocation5_spill] sm:$0xff] %v1871_v6  ;;  %v1873_v7 = vpop.permute.xlu1 %574 }
  0xc0   : > { %2666 = vst [vmem:[#allocation6_spill] sm:$0xff] %v1873_v7 }
  0xc2   : > { %v1875_v8 = vpop.permute.xlu0 %641 }
  0xc3   : > { %2667 = vst [vmem:[#allocation7_spill] sm:$0xff] %v1875_v8  ;;  %v1877_v11 = vpop.permute.xlu1 %646 }
  0xc4   : > { %2668 = vst [vmem:[#allocation8_spill] sm:$0xff] %v1877_v11 }
  0xc6   : > { %v1880_v14 = vpop.permute.xlu0 %713 }
  0xc7   : > { %2669 = vst [vmem:[#allocation9_spill] sm:$0xff] %v1880_v14  ;;  %v1888_v20 = vpop.permute.xlu1 %718 }
  0xc8   : > { %2670 = vst [vmem:[#allocation10_spill] sm:$0xff] %v1888_v20 }
  0xca   : > { %v1894_v23 = vpop.permute.xlu0 %785 }
  0xcb   : > { %2671 = vst [vmem:[#allocation11_spill] sm:$0xff] %v1894_v23  ;;  %v1912_v33 = vpop.permute.xlu1 %790 }
  0xcc   : > { %2672 = vst [vmem:[#allocation12_spill] sm:$0xff] %v1912_v33 }
  0xce   : > { %v833_v39 = vpop.permute.xlu0 %832 }
  0xcf   : > { %v838_v47 = vpop.permute.xlu1 %837 }
  0xf1   : > { %v480_v10 = vpop.f32.mrb[0].mxu0 }
  0xf2   : > { %v481_v12 = vadd.f32 %v480_v10, %v1835_v50  ;;  %v482_v13 = vpop.f32.mrb[1].mxu0 }
  0xf4   : > { %v1882_v15 = vmax.f32 %v481_v12, 0.0 }
  0xf5   : > { %v486_v17 = vpop.f32.mrb[2].mxu0 }
  0xf6   : > { %v487_v18 = vadd.f32 %v486_v17, %v1837_v52  ;;  %v488_v19 = vpop.f32.mrb[3].mxu0  ;;  %511 = vrot.lane.b32.xlu0 %v1882_v15, %s1582_s17 }
  0xf7   : > { %v489_v12 = vadd.f32 %v488_v19, %v1837_v52  ;;  %v2021_v52 = vpop.permute.xlu1 %909 }
  0xf8   : > { %v1890_v21 = vmax.f32 %v487_v18, 0.0  ;;  %2678 = vst [vmem:[#allocation18_spill] sm:$0xff] %v2021_v52 }
  0xf9   : > { %v492_v24 = vpop.f32.mrb[4].mxu0  ;;  %v1969_v16 = vmax.f32 %v489_v12, 0.0 }
  0xfa   : > { %v493_v27 = vadd.f32 %v492_v24, %v394_v51  ;;  %v494_v28 = vpop.f32.mrb[5].mxu0  ;;  %513 = vrot.lane.b32.xlu1 %v1890_v21, %s1582_s17  ;;  %585 = vrot.lane.b32.xlu0 %v1882_v15, %s1583_s20 }
  0xfb   : > { %v495_v29 = vadd.f32 %v494_v28, %v394_v51  ;;  %v2033_v17 = vpop.permute.xlu1 %981 }
  0xfc   : > { %v1905_v30 = vmax.f32 %v493_v27, 0.0  ;;  %2680 = vst [vmem:[#allocation20_spill] sm:$0xff] %v2033_v17 }
  0xfd   : > { %v1910_v32 = vmax.f32 %v495_v29, 0.0  ;;  %v498_v34 = vpop.f32.mrb[6].mxu0 }
  0xfe   : > { %587 = vrot.lane.b32.xlu1 %v1890_v21, %s1583_s20  ;;  %657 = vrot.lane.b32.xlu0 %v1882_v15, %s1584_s21  ;;  %v499_v36 = vadd.f32 %v498_v34, %v399_v53  ;;  %v500_v37 = vpop.f32.mrb[7].mxu0  ;;  %v816_v38 = vmul.f32 %v1908_v31, %v1905_v30 }
  0xff   : > { %v501_v40 = vadd.f32 %v500_v37, %v399_v53  ;;  %v817_v41 = vmul.f32 %v1915_v35, %v1910_v32  ;;  %v483_v53 = vadd.f32 %v482_v13, %v1835_v50  ;;  %v2015_v50 = vpop.permute.xlu0 %904  ;;  %v2041_v19 = vpop.permute.xlu1 %1053 }
 0x100   : > { %v1925_v42 = vmax.f32 %v499_v36, 0.0  ;;  %v1927_v43 = vmul.f32 %v833_v39, %v816_v38  ;;  %2677 = vst [vmem:[#allocation17_spill] sm:$0xff] %v2015_v50  ;;  %2682 = vst [vmem:[#allocation22_spill] sm:$0xff] %v2041_v19  ;;  %v1439_v50 = vld [vmem:[%s2635_s7 + $0xa] sm:$0x3] }
 0x101   : > { %v1929_v44 = vmax.f32 %v501_v40, 0.0  ;;  %v1931_v45 = vmul.f32 %v833_v39, %v817_v41  ;;  %v1962_v10 = vmax.f32 %v483_v53, 0.0  ;;  %v314_v40 = vld [vmem:[%s2632_s4 + $0x10] sm:$0xff] }
 0x102   : > { %2673 = vst [vmem:[#allocation13_spill] sm:$0xff] %v1927_v43  ;;  %659 = vrot.lane.b32.xlu1 %v1890_v21, %s1584_s21  ;;  %729 = vrot.lane.b32.xlu0 %v1882_v15, %s1585_s22  ;;  %v818_v46 = vmul.f32 %v1908_v31, %v1925_v42  ;;  %v815_v43 = vmul.f32 %v1915_v35, %v1969_v16 }
 0x103   : > { %2674 = vst [vmem:[#allocation14_spill] sm:$0xff] %v1931_v45  ;;  %v819_v48 = vmul.f32 %v1915_v35, %v1929_v44  ;;  %v2027_v13 = vpop.permute.xlu0 %976  ;;  %v2053_v26 = vpop.permute.xlu1 %1115  ;;  %v1435_v45 = vld [vmem:[%s2635_s7 + $0x2] sm:$0x3] }
 0x104   : > { %v1941_v49 = vmul.f32 %v838_v47, %v818_v46  ;;  %2679 = vst [vmem:[#allocation19_spill] sm:$0xff] %v2027_v13  ;;  %2683 = vst [vmem:[#allocation23_spill] sm:$0xff] %v2053_v26  ;;  %v315_v46 = vld [vmem:[%s2632_s4 + $0x18] sm:$0xff] }
 0x105   : > { %v1943_v51 = vmul.f32 %v838_v47, %v819_v48 }
 0x106   : > { %2675 = vst [vmem:[#allocation15_spill] sm:$0xff] %v1941_v49  ;;  %731 = vrot.lane.b32.xlu1 %v1890_v21, %s1585_s22  ;;  %848 = vrot.lane.b32.xlu0 %v1882_v15, %s1586_s23  ;;  %v813_v49 = vmul.f32 %v1915_v35, %v1962_v10  ;;  %v2153_v35 = vrot.slane %v1435_v45, %v1892_v22 }
 0x107   : > { %2676 = vst [vmem:[#allocation16_spill] sm:$0xff] %v1943_v51  ;;  %v2035_v18 = vpop.permute.xlu0 %1048  ;;  %v2061_v28 = vpop.permute.xlu1 %1125 }
 0x108   : > { %2681 = vst [vmem:[#allocation21_spill] sm:$0xff] %v2035_v18  ;;  %2685 = vst [vmem:[#allocation25_spill] sm:$0xff] %v2061_v28 }
 0x10a   : > { %850 = vrot.lane.b32.xlu1 %v1890_v21, %s1586_s23  ;;  %920 = vrot.lane.b32.xlu0 %v1882_v15, %s1587_s24 }
 0x10b   : > { %v2047_v24 = vpop.permute.xlu0 %1110 }
 0x10e   : > { %922 = vrot.lane.b32.xlu1 %v1890_v21, %s1587_s24  ;;  %992 = vrot.lane.b32.xlu0 %v1882_v15, %s1588_s26 }
 0x10f   : > { %v2055_v27 = vpop.permute.xlu0 %1120 }
 0x110   : > { %2684 = vst [vmem:[#allocation24_spill] sm:$0xff] %v2055_v27  ;;  %v2688_v27 = vlaneseq }
 0x112   : > { %994 = vrot.lane.b32.xlu1 %v1890_v21, %s1588_s26  ;;  %1064 = vrot.lane.b32.xlu0 %v1882_v15, %s1589_s10  ;;  %v2123_v51 = vand.u32 127, %v2688_v27  ;;  %v362_v27 = vld [vmem:[%s2635_s7] sm:$0x3] }
 0x113   : > { %v2067_v29 = vpop.permute.xlu0 %1202  ;;  %v2162_v19 = vrot.slane %v362_v27, %v1892_v22 }
 0x114   : > { %2686 = vst [vmem:[#allocation26_spill] sm:$0xff] %v2067_v29  ;;  %vm529_vm1 = vcmp.lt.s32.totalorder %v2123_v51, 17  ;;  %vm601_vm2 = vcmp.lt.s32.totalorder %v2123_v51, 16  ;;  %vm673_vm3 = vcmp.lt.s32.totalorder %v2123_v51, 15  ;;  %vm745_vm4 = vcmp.lt.s32.totalorder %v2123_v51, 1 }
 0x115   : > { %2690 = vst [vmem:[#allocation29_spill] sm:$0xff] %v2162_v19  ;;  %vm864_vm5 = vcmp.lt.s32.totalorder %v2123_v51, 127  ;;  %vm936_vm6 = vcmp.lt.s32.totalorder %v2123_v51, 113  ;;  %vm1008_vm7 = vcmp.lt.s32.totalorder %v2123_v51, 112  ;;  %vm1080_vm8 = vcmp.lt.s32.totalorder %v2123_v51, 111 }
 0x116   : > { %1066 = vrot.lane.b32.xlu1 %v1890_v21, %s1589_s10  ;;  %519 = vrot.lane.b32.xlu0 %v1962_v10, %s1582_s17 }
 0x11a   : > { %521 = vrot.lane.b32.xlu1 %v1969_v16, %s1582_s17  ;;  %593 = vrot.lane.b32.xlu0 %v1962_v10, %s1583_s20 }
 0x11e   : > { %595 = vrot.lane.b32.xlu1 %v1969_v16, %s1583_s20  ;;  %665 = vrot.lane.b32.xlu0 %v1962_v10, %s1584_s21 }
 0x122   : > { %667 = vrot.lane.b32.xlu1 %v1969_v16, %s1584_s21  ;;  %737 = vrot.lane.b32.xlu0 %v1962_v10, %s1585_s22 }
 0x126   : > { %739 = vrot.lane.b32.xlu1 %v1969_v16, %s1585_s22  ;;  %856 = vrot.lane.b32.xlu0 %v1962_v10, %s1586_s23 }
 0x12a   : > { %858 = vrot.lane.b32.xlu1 %v1969_v16, %s1586_s23  ;;  %928 = vrot.lane.b32.xlu0 %v1962_v10, %s1587_s24 }
 0x12e   : > { %930 = vrot.lane.b32.xlu1 %v1969_v16, %s1587_s24  ;;  %1000 = vrot.lane.b32.xlu0 %v1962_v10, %s1588_s26 }
 0x132   : > { %1002 = vrot.lane.b32.xlu1 %v1969_v16, %s1588_s26  ;;  %1072 = vrot.lane.b32.xlu0 %v1962_v10, %s1589_s10 }
 0x136   : > { %1074 = vrot.lane.b32.xlu1 %v1969_v16, %s1589_s10  ;;  %515 = vrot.lane.b32.xlu0 %v1905_v30, %s1582_s17  ;;  %v2156_v16 = vrot.slane %v1435_v45, %v1896_v25 }
 0x138   : > { %2689 = vst [vmem:[#allocation28_spill] sm:$0xff] %v2156_v16 }
 0x13a   : > { %517 = vrot.lane.b32.xlu1 %v1925_v42, %s1582_s17  ;;  %589 = vrot.lane.b32.xlu0 %v1905_v30, %s1583_s20 }
 0x13e   : > { %591 = vrot.lane.b32.xlu1 %v1925_v42, %s1583_s20  ;;  %661 = vrot.lane.b32.xlu0 %v1905_v30, %s1584_s21 }
 0x142   : > { %663 = vrot.lane.b32.xlu1 %v1925_v42, %s1584_s21  ;;  %733 = vrot.lane.b32.xlu0 %v1905_v30, %s1585_s22 }
 0x146   : > { %735 = vrot.lane.b32.xlu1 %v1925_v42, %s1585_s22  ;;  %852 = vrot.lane.b32.xlu0 %v1905_v30, %s1586_s23 }
 0x14a   : > { %854 = vrot.lane.b32.xlu1 %v1925_v42, %s1586_s23  ;;  %924 = vrot.lane.b32.xlu0 %v1905_v30, %s1587_s24 }
 0x14e   : > { %926 = vrot.lane.b32.xlu1 %v1925_v42, %s1587_s24  ;;  %996 = vrot.lane.b32.xlu0 %v1905_v30, %s1588_s26 }
 0x152   : > { %998 = vrot.lane.b32.xlu1 %v1925_v42, %s1588_s26  ;;  %1068 = vrot.lane.b32.xlu0 %v1905_v30, %s1589_s10  ;;  %v2073_v30 = vpop.permute.xlu1 %1207 }
 0x153   : > { %2687 = vst [vmem:[#allocation27_spill] sm:$0xff] %v2073_v30 }
 0x156   : > { %1070 = vrot.lane.b32.xlu1 %v1925_v42, %s1589_s10  ;;  %523 = vrot.lane.b32.xlu0 %v1910_v32, %s1582_s17 }
 0x15a   : > { %525 = vrot.lane.b32.xlu1 %v1929_v44, %s1582_s17  ;;  %597 = vrot.lane.b32.xlu0 %v1910_v32, %s1583_s20  ;;  %s1454_s17 = sshll.u32 %s1657_s9, 8  ;;  %s1516_s9 = scalar_lea.vmem %s2588_s19, 256 }
 0x15b   : > { %p1517_p11 = scmp.ne.s32.totalorder %s2588_s19, %s1516_s9 }
 0x15d   : > { %p1518_p12 = pnand %p1517_p11, %p1674_p5 }
 0x15e   : > { %599 = vrot.lane.b32.xlu1 %v1929_v44, %s1583_s20  ;;  %669 = vrot.lane.b32.xlu0 %v1910_v32, %s1584_s21 }
 0x15f   : > { %p1519_p13 = pneg %p1518_p12 }
 0x162   : > { %671 = vrot.lane.b32.xlu1 %v1929_v44, %s1584_s21  ;;  %741 = vrot.lane.b32.xlu0 %v1910_v32, %s1585_s22 }
 0x166   : > { %743 = vrot.lane.b32.xlu1 %v1929_v44, %s1585_s22  ;;  %860 = vrot.lane.b32.xlu0 %v1910_v32, %s1586_s23  ;;  %s2586_s22 = scalar_lea.hbm %s2636_s8, %s1454_s17 }
 0x168   : > { %v512_v34 = vpop.permute.xlu0 %511 }
 0x16a   : > { %862 = vrot.lane.b32.xlu1 %v1929_v44, %s1586_s23  ;;  %932 = vrot.lane.b32.xlu0 %v1910_v32, %s1587_s24  ;;  %s1323_s23 = scalar_lea.sflag [#allocation3], %s296_s12 }
 0x16c   : > { %v514_v36 = vpop.permute.xlu1 %513  ;;  %v586_v37 = vpop.permute.xlu0 %585 }
 0x16e   : > { %934 = vrot.lane.b32.xlu1 %v1929_v44, %s1587_s24  ;;  %1004 = vrot.lane.b32.xlu0 %v1910_v32, %s1588_s26 }
 0x170   : > { %v2083_v38 = vpop.permute.xlu1 %587  ;;  %v2085_v39 = vpop.permute.xlu0 %657 }
 0x172   : > { %1006 = vrot.lane.b32.xlu1 %v1929_v44, %s1588_s26  ;;  %1076 = vrot.lane.b32.xlu0 %v1910_v32, %s1589_s10  ;;  %v317_v32 = vld [vmem:[%s2634_s6] sm:$0xff] }
 0x174   : > { %v2094_v41 = vpop.permute.xlu1 %659  ;;  %v2096_v42 = vpop.permute.xlu0 %729 }
 0x176   : > { %1078 = vrot.lane.b32.xlu1 %v1929_v44, %s1589_s10  ;;  %1212 = vperm.xlu0 %1512, %v314_v40  }
 0x178   : > { %v2106_v47 = vpop.permute.xlu1 %731  ;;  %v2108_v48 = vpop.permute.xlu0 %848 }
 0x17a   : > { %1217 = vperm.xlu1 %1513, %v315_v46   ;;  %1238 = vperm.xlu0 %1512, %v317_v32   ;;  %v812_v46 = vmul.f32 %v1908_v31, %v1882_v15  ;;  %v814_v32 = vmul.f32 %v1908_v31, %v1890_v21  ;;  %v1436_v15 = vld [vmem:[%s2635_s7 + $0x4] sm:$0x3]  ;;  %v2146_v21 = vmul.f32 %v1855_v62, %v813_v49 }
 0x17b   : > { %v2165_v49 = vrot.slane %v362_v27, %v1896_v25  ;;  %v2177_v13 = vrot.slane %v1436_v15, %v1892_v22  ;;  %v2180_v27 = vrot.slane %v1436_v15, %v1896_v25  ;;  %v1440_v15 = vld [vmem:[%s2635_s7 + $0xc] sm:$0x3] }
 0x17c   : > { %v2110_v53 = vpop.permute.xlu1 %850  ;;  %v2112_v12 = vpop.permute.xlu0 %920  ;;  %v2149_v31 = vmul.f32 %v1855_v62, %v812_v46  ;;  %v2159_v17 = vmul.f32 %v1857_v63, %v814_v32  ;;  %v1437_v62 = vld [vmem:[%s2635_s7 + $0x6] sm:$0x3]  ;;  %v2172_v46 = vmul.f32 %v1857_v63, %v815_v43  ;;  %v2218_v11 = vrot.slane %v1440_v15, %v1892_v22 }
 0x17d   : > { %2691 = vst [vmem:[#allocation30_spill] sm:$0xff] %v2165_v49  ;;  %v2205_v7 = vrot.slane %v1437_v62, %v1896_v25  ;;  %v2240_v30 = vrot.slane %v1440_v15, %v1896_v25 }
 0x180   : > { %v2114_v44 = vpop.permute.xlu1 %922  ;;  %v2116_v40 = vpop.permute.xlu0 %992 }
 0x184   : > { %v2118_v9 = vpop.permute.xlu1 %994  ;;  %v2120_v28 = vpop.permute.xlu0 %1064 }
 0x188   : > { %v2136_v20 = vpop.permute.xlu1 %1066  ;;  %v520_v10 = vpop.permute.xlu0 %519 }
 0x189   : > { %v530_v45 = vsel %vm529_vm1, %v512_v34, %v520_v10  ;;  %v534_v63 = vsel %vm529_vm1, %v520_v10, %v512_v34  ;;  %v2202_v10 = vrot.slane %v1437_v62, %v1892_v22  ;;  %v1441_v62 = vld [vmem:[%s2635_s7 + $0xe] sm:$0x3] }
 0x18a   : > { %v2250_v26 = vrot.slane %v1441_v62, %v1896_v25 }
 0x18c   : > { %v522_v32 = vpop.permute.xlu1 %521  ;;  %v594_v52 = vpop.permute.xlu0 %593 }
 0x18d   : > { %v535_v43 = vsel %vm529_vm1, %v522_v32, %v514_v36  ;;  %v602_v33 = vsel %vm601_vm2, %v586_v37, %v594_v52  ;;  %v606_v18 = vsel %vm601_vm2, %v594_v52, %v586_v37  ;;  %v531_v23 = vsel %vm529_vm1, %v514_v36, %v522_v32 }
 0x18e   : > { %v621_v14 = vmul.f32 %v2153_v35, %v606_v18  ;;  %v622_v34 = vmul.f32 %v2156_v16, %v602_v33  ;;  %v2209_v52 = vrot.slane %v1439_v50, %v1892_v22  ;;  %v2212_v37 = vrot.slane %v1439_v50, %v1896_v25 }
 0x18f   : > { %v549_v36 = vmul.f32 %v2162_v19, %v534_v63  ;;  %v550_v18 = vmul.f32 %v2165_v49, %v530_v45  ;;  %v551_v33 = vmul.f32 %v2162_v19, %v535_v43  ;;  %v552_v8 = vmul.f32 %v2165_v49, %v531_v23  ;;  %v1442_v43 = vld [vmem:[%s2635_s7 + $0x10] sm:$0x3] }
 0x190   : > { %v596_v32 = vpop.permute.xlu1 %595  ;;  %v666_v6 = vpop.permute.xlu0 %665  ;;  %v649_v19 = vmul.f32 %v1843_v56, %v621_v14  ;;  %v650_v23 = vmul.f32 %v1843_v56, %v622_v34 }
 0x191   : > { %v603_v50 = vsel %vm601_vm2, %v2083_v38, %v596_v32  ;;  %v607_v45 = vsel %vm601_vm2, %v596_v32, %v2083_v38  ;;  %v678_v63 = vsel %vm673_vm3, %v666_v6, %v2085_v39  ;;  %v674_v38 = vsel %vm673_vm3, %v2085_v39, %v666_v6 }
 0x192   : > { %v623_v49 = vmul.f32 %v2153_v35, %v607_v45  ;;  %v624_v29 = vmul.f32 %v2156_v16, %v603_v50  ;;  %v2247_v32 = vrot.slane %v1441_v62, %v1892_v22  ;;  %v577_v14 = vmul.f32 %v1839_v54, %v549_v36 }
 0x193   : > { %v578_v56 = vmul.f32 %v1839_v54, %v550_v18  ;;  %v693_v34 = vmul.f32 %v2177_v13, %v678_v63  ;;  %v2257_v50 = vrot.slane %v1442_v43, %v1892_v22  ;;  %v579_v6 = vmul.f32 %v1841_v55, %v551_v33 }
 0x194   : > { %v668_v15 = vpop.permute.xlu1 %667  ;;  %v738_v45 = vpop.permute.xlu0 %737  ;;  %v580_v39 = vmul.f32 %v1841_v55, %v552_v8  ;;  %v2265_v36 = vrot.slane %v1442_v43, %v1896_v25  ;;  %v1136_v54 = vadd.f32 %v649_v19, %v577_v14  ;;  %v651_v63 = vmul.f32 %v1845_v57, %v623_v49 }
 0x195   : > { %v679_v62 = vsel %vm673_vm3, %v668_v15, %v2094_v41  ;;  %v2267_v18 = vadd.f32 %v650_v23, %v578_v56  ;;  %v694_v16 = vmul.f32 %v2180_v27, %v674_v38  ;;  %v652_v22 = vmul.f32 %v1845_v57, %v624_v29 }
 0x196   : > { %v675_v55 = vsel %vm673_vm3, %v2094_v41, %v668_v15  ;;  %v746_v8 = vsel %vm745_vm4, %v2096_v42, %v738_v45  ;;  %v750_v25 = vsel %vm745_vm4, %v738_v45, %v2096_v42  ;;  %v721_v19 = vmul.f32 %v1847_v58, %v693_v34 }
 0x197   : > { %v695_v49 = vmul.f32 %v2177_v13, %v679_v62  ;;  %v765_v33 = vmul.f32 %v2202_v10, %v750_v25  ;;  %v766_v57 = vmul.f32 %v2205_v7, %v746_v8  ;;  %v696_v14 = vmul.f32 %v2180_v27, %v675_v55 }
 0x198   : > { %v740_v29 = vpop.permute.xlu1 %739  ;;  %v857_v43 = vpop.permute.xlu0 %856 }
 0x199   : > { %v747_v41 = vsel %vm745_vm4, %v2106_v47, %v740_v29  ;;  %v751_v42 = vsel %vm745_vm4, %v740_v29, %v2106_v47  ;;  %v865_v23 = vsel %vm864_vm5, %v2108_v48, %v857_v43  ;;  %v869_v38 = vsel %vm864_vm5, %v857_v43, %v2108_v48 }
 0x19a   : > { %v793_v56 = vmul.f32 %v1851_v60, %v765_v33  ;;  %v767_v34 = vmul.f32 %v2202_v10, %v751_v42  ;;  %v768_v15 = vmul.f32 %v2205_v7, %v747_v41  ;;  %v722_v47 = vmul.f32 %v1847_v58, %v694_v16 }
 0x19b   : > { %v794_v45 = vmul.f32 %v1851_v60, %v766_v57  ;;  %v884_v62 = vmul.f32 %v2209_v52, %v865_v23  ;;  %v885_v8 = vmul.f32 %v2212_v37, %v869_v38  ;;  %v723_v48 = vmul.f32 %v1849_v59, %v695_v49 }
 0x19c   : > { %v1144_v25 = vadd.f32 %v793_v56, %v721_v19  ;;  %v795_v55 = vmul.f32 %v1853_v61, %v767_v34  ;;  %v796_v33 = vmul.f32 %v1853_v61, %v768_v15  ;;  %v859_v29 = vpop.permute.xlu1 %858  ;;  %v929_v43 = vpop.permute.xlu0 %928  ;;  %v1138_v41 = vadd.f32 %v651_v63, %v579_v6 }
 0x19d   : > { %v912_v42 = vmul.f32 %v1859_v0, %v884_v62  ;;  %v866_v58 = vsel %vm864_vm5, %v2110_v53, %v859_v29  ;;  %v870_v60 = vsel %vm864_vm5, %v859_v29, %v2110_v53  ;;  %v724_v16 = vmul.f32 %v1849_v59, %v696_v14 }
 0x19e   : > { %v1146_v19 = vadd.f32 %v795_v55, %v723_v48  ;;  %v913_v49 = vmul.f32 %v1859_v0, %v885_v8  ;;  %v886_v61 = vmul.f32 %v2209_v52, %v866_v58  ;;  %v1139_v57 = vadd.f32 %v652_v22, %v580_v39 }
 0x19f   : > { %v1145_v23 = vadd.f32 %v794_v45, %v722_v47  ;;  %v887_v6 = vmul.f32 %v2212_v37, %v870_v60  ;;  %v937_v63 = vsel %vm936_vm6, %v2112_v12, %v929_v43  ;;  %v1168_v38 = vadd.f32 %v1144_v25, %v1136_v54 }
 0x1a0   : > { %v1147_v56 = vadd.f32 %v796_v33, %v724_v16  ;;  %v941_v53 = vsel %vm936_vm6, %v929_v43, %v2112_v12  ;;  %v956_v59 = vmul.f32 %v2218_v11, %v937_v63  ;;  %v931_v14 = vpop.permute.xlu1 %930  ;;  %v1001_v0 = vpop.permute.xlu0 %1000  ;;  %v1152_v34 = vadd.f32 %v912_v42, %v2149_v31 }
 0x1a1   : > { %v957_v39 = vmul.f32 %v2240_v30, %v941_v53  ;;  %v938_v22 = vsel %vm936_vm6, %v2114_v44, %v931_v14  ;;  %v942_v54 = vsel %vm936_vm6, %v931_v14, %v2114_v44  ;;  %v1170_v15 = vadd.f32 %v1146_v19, %v1138_v41 }
 0x1a2   : > { %v1153_v47 = vadd.f32 %v913_v49, %v2146_v21  ;;  %v914_v12 = vmul.f32 %v1861_v1, %v886_v61  ;;  %v915_v45 = vmul.f32 %v1861_v1, %v887_v6  ;;  %v958_v62 = vmul.f32 %v2218_v11, %v938_v22 }
 0x1a3   : > { %v959_v31 = vmul.f32 %v2240_v30, %v942_v54  ;;  %v1009_v8 = vsel %vm1008_vm7, %v2116_v40, %v1001_v0  ;;  %v1013_v48 = vsel %vm1008_vm7, %v1001_v0, %v2116_v40  ;;  %v984_v44 = vmul.f32 %v1863_v2, %v956_v59 }
 0x1a4   : > { %v985_v21 = vmul.f32 %v1863_v2, %v957_v39  ;;  %v1028_v25 = vmul.f32 %v2247_v32, %v1009_v8  ;;  %v1029_v1 = vmul.f32 %v2250_v26, %v1013_v48  ;;  %v1003_v55 = vpop.permute.xlu1 %1002  ;;  %v1073_v33 = vpop.permute.xlu0 %1072  ;;  %v1154_v16 = vadd.f32 %v914_v12, %v2159_v17 }
 0x1a5   : > { %v1010_v29 = vsel %vm1008_vm7, %v2118_v9, %v1003_v55  ;;  %v1014_v43 = vsel %vm1008_vm7, %v1003_v55, %v2118_v9  ;;  %v1081_v40 = vsel %vm1080_vm8, %v2120_v28, %v1073_v33  ;;  %v1085_v2 = vsel %vm1080_vm8, %v1073_v33, %v2120_v28 }
 0x1a6   : > { %v1056_v41 = vmul.f32 %v1867_v4, %v1028_v25  ;;  %v1057_v42 = vmul.f32 %v1867_v4, %v1029_v1  ;;  %v1030_v58 = vmul.f32 %v2247_v32, %v1010_v29  ;;  %v1031_v60 = vmul.f32 %v2250_v26, %v1014_v43 }
 0x1a7   : > { %v986_v9 = vmul.f32 %v1865_v3, %v958_v62  ;;  %v987_v19 = vmul.f32 %v1865_v3, %v959_v31  ;;  %v1100_v49 = vmul.f32 %v2257_v50, %v1081_v40  ;;  %v1155_v59 = vadd.f32 %v915_v45, %v2172_v46  ;;  %v2693_v40 = vld [vmem:[#allocation26_spill] sm:$0xff] }
 0x1a8   : > { %v1160_v61 = vadd.f32 %v1056_v41, %v984_v44  ;;  %v1161_v6 = vadd.f32 %v1057_v42, %v985_v21  ;;  %v1058_v28 = vmul.f32 %v1869_v5, %v1030_v58  ;;  %v1059_v63 = vmul.f32 %v1869_v5, %v1031_v60  ;;  %v1075_v53 = vpop.permute.xlu1 %1074  ;;  %v2373_v4 = vpop.permute.xlu0 %515 }
 0x1a9   : > { %v1101_v14 = vmul.f32 %v2265_v36, %v1085_v2  ;;  %v1082_v17 = vsel %vm1080_vm8, %v2136_v20, %v1075_v53  ;;  %v1086_v3 = vsel %vm1080_vm8, %v1075_v53, %v2136_v20  ;;  %v1169_v12 = vadd.f32 %v1145_v23, %v2267_v18 }
 0x1aa   : > { %v1176_v0 = vadd.f32 %v1160_v61, %v1152_v34  ;;  %v1162_v39 = vadd.f32 %v1058_v28, %v986_v9  ;;  %v1163_v22 = vadd.f32 %v1059_v63, %v987_v19  ;;  %v1102_v5 = vmul.f32 %v2257_v50, %v1082_v17  ;;  %v2692_v34 = vld [vmem:[#allocation23_spill] sm:$0xff] }
 0x1ab   : > { %v1103_v54 = vmul.f32 %v2265_v36, %v1086_v3  ;;  %v1171_v46 = vadd.f32 %v1147_v56, %v1139_v57  ;;  %v1177_v45 = vadd.f32 %v1161_v6, %v1153_v47  ;;  %v1128_v31 = vmul.f32 %v2047_v24, %v1100_v49 }
 0x1ac   : > { %v1178_v62 = vadd.f32 %v1162_v39, %v1154_v16  ;;  %v518_v8 = vpop.permute.xlu1 %517  ;;  %v590_v48 = vpop.permute.xlu0 %589  ;;  %v1179_v44 = vadd.f32 %v1163_v22, %v1155_v59  ;;  %v1184_v21 = vadd.f32 %v1176_v0, %v1168_v38  ;;  %v1129_v20 = vmul.f32 %v2047_v24, %v1101_v14  ;;  %v2694_v38 = vld [vmem:[#allocation27_spill] sm:$0xff] }
 0x1ad   : > { %v1130_v25 = vmul.f32 %v2692_v34, %v1102_v5  ;;  %v1185_v1 = vadd.f32 %v1177_v45, %v1169_v12  ;;  %v1131_v55 = vmul.f32 %v2692_v34, %v1103_v54 }
 0x1ae   : > { %v1187_v33 = vadd.f32 %v1179_v44, %v1171_v46  ;;  %v1186_v29 = vadd.f32 %v1178_v62, %v1170_v15  ;;  %v1192_v43 = vadd.f32 %v1184_v21, %v1128_v31 }
 0x1af   : > { %v1193_v18 = vadd.f32 %v1185_v1, %v1129_v20 }
 0x1b0   : > { %v592_v57 = vpop.permute.xlu1 %591  ;;  %v662_v23 = vpop.permute.xlu0 %661  ;;  %v1195_v56 = vadd.f32 %v1187_v33, %v1131_v55  ;;  %v1194_v47 = vadd.f32 %v1186_v29, %v1130_v25  ;;  %v1220_v2 = vadd.f32 %v2693_v40, %v1192_v43  ;;  %v2695_v55 = vld [vmem:[#allocation28_spill] sm:$0xff]  ;;  %v2696_v29 = vld [vmem:[#allocation29_spill] sm:$0xff]  ;;  %v2697_v43 = vld [vmem:[#allocation30_spill] sm:$0xff] }
 0x1b1   : > { %v1221_v41 = vadd.f32 %v2693_v40, %v1193_v18 }
 0x1b2   : > { %v1223_v42 = vadd.f32 %v2694_v38, %v1195_v56  ;;  %v1222_v24 = vadd.f32 %v2694_v38, %v1194_v47  ;;  %v1228_v19 = vmax.f32 %v1220_v2, 0.0 }
 0x1b3   : > { %v1229_v16 = vmax.f32 %v1221_v41, 0.0 }
 0x1b4   : > { %v664_v58 = vpop.permute.xlu1 %663  ;;  %v734_v60 = vpop.permute.xlu0 %733  ;;  %v1231_v9 = vmax.f32 %v1223_v42, 0.0  ;;  %v1230_v15 = vmax.f32 %v1222_v24, 0.0  ;;  %v2698_v42 = vld [vmem:[#allocation7_spill] sm:$0xff] }
 0x1b6   : > { %v1455_v49 = vpack.c.bf16 %v1231_v9, %v1229_v16  ;;  %v1457_v61 = vpack.c.bf16 %v1230_v15, %v1228_v19  ;;  %v2699_v19 = vld [vmem:[#allocation8_spill] sm:$0xff] }
 0x1b8   : > { %v2394_v6 = vpop.permute.xlu1 %735  ;;  %1456 = vmatprep.subr.bf16.mxu1 %v1455_v49  ;;  %v2396_v28 = vpop.permute.xlu0 %852 }
 0x1b9   : > { %1458 = vmatpush1.bf16.msra.mxu1 %v1457_v61 }
 0x1bc   : > { %v2398_v63 = vpop.permute.xlu1 %854  ;;  %v2400_v53 = vpop.permute.xlu0 %924 }
 0x1c0   : > { %v2402_v59 = vpop.permute.xlu1 %926  ;;  %v2404_v14 = vpop.permute.xlu0 %996 }
 0x1c4   : > { %v2406_v17 = vpop.permute.xlu1 %998  ;;  %v2408_v3 = vpop.permute.xlu0 %1068 }
 0x1c8   : > { %v2410_v0 = vpop.permute.xlu1 %1070  ;;  %v524_v39 = vpop.permute.xlu0 %523 }
 0x1c9   : > { %v532_v62 = vsel %vm529_vm1, %v2373_v4, %v524_v39  ;;  %v536_v31 = vsel %vm529_vm1, %v524_v39, %v2373_v4  ;;  %v2700_v39 = vld [vmem:[#allocation5_spill] sm:$0xff] }
 0x1ca   : > { %v553_v4 = vmul.f32 %v2696_v29, %v536_v31  ;;  %v554_v18 = vmul.f32 %v2697_v43, %v532_v62 }
 0x1cc   : > { %v526_v22 = vpop.permute.xlu1 %525  ;;  %v598_v5 = vpop.permute.xlu0 %597 }
 0x1cd   : > { %v604_v46 = vsel %vm601_vm2, %v590_v48, %v598_v5  ;;  %v608_v45 = vsel %vm601_vm2, %v598_v5, %v590_v48  ;;  %v533_v20 = vsel %vm529_vm1, %v518_v8, %v526_v22  ;;  %v537_v48 = vsel %vm529_vm1, %v526_v22, %v518_v8 }
 0x1ce   : > { %v625_v1 = vmul.f32 %v2153_v35, %v608_v45  ;;  %v626_v33 = vmul.f32 %v2695_v55, %v604_v46  ;;  %v555_v47 = vmul.f32 %v2696_v29, %v537_v48  ;;  %v556_v40 = vmul.f32 %v2697_v43, %v533_v20 }
 0x1cf   : > { %v581_v22 = vmul.f32 %v2700_v39, %v553_v4  ;;  %v582_v5 = vmul.f32 %v2700_v39, %v554_v18  ;;  %v2703_v18 = vld [vmem:[#allocation11_spill] sm:$0xff] }
 0x1d0   : > { %v600_v54 = vpop.permute.xlu1 %599  ;;  %v670_v12 = vpop.permute.xlu0 %669  ;;  %v653_v24 = vmul.f32 %v2698_v42, %v625_v1  ;;  %v654_v16 = vmul.f32 %v2698_v42, %v626_v33 }
 0x1d1   : > { %v605_v44 = vsel %vm601_vm2, %v592_v57, %v600_v54  ;;  %v609_v21 = vsel %vm601_vm2, %v600_v54, %v592_v57  ;;  %v676_v8 = vsel %vm673_vm3, %v662_v23, %v670_v12  ;;  %v680_v2 = vsel %vm673_vm3, %v670_v12, %v662_v23  ;;  %v2701_v54 = vld [vmem:[#allocation6_spill] sm:$0xff] }
 0x1d2   : > { %v627_v56 = vmul.f32 %v2153_v35, %v609_v21  ;;  %v628_v57 = vmul.f32 %v2695_v55, %v605_v44  ;;  %v697_v61 = vmul.f32 %v2177_v13, %v680_v2  ;;  %v698_v23 = vmul.f32 %v2180_v27, %v676_v8  ;;  %v2702_v55 = vld [vmem:[#allocation9_spill] sm:$0xff] }
 0x1d3   : > { %v583_v12 = vmul.f32 %v2701_v54, %v555_v47  ;;  %v584_v46 = vmul.f32 %v2701_v54, %v556_v40  ;;  %v2462_v20 = vadd.f32 %v653_v24, %v581_v22  ;;  %v2464_v48 = vadd.f32 %v654_v16, %v582_v5 }
 0x1d4   : > { %v672_v34 = vpop.permute.xlu1 %671  ;;  %v742_v25 = vpop.permute.xlu0 %741  ;;  %v655_v15 = vmul.f32 %v2699_v19, %v627_v56  ;;  %v656_v49 = vmul.f32 %v2699_v19, %v628_v57  ;;  %v725_v33 = vmul.f32 %v2702_v55, %v697_v61  ;;  %v726_v29 = vmul.f32 %v2702_v55, %v698_v23  ;;  %v2704_v23 = vld [vmem:[#allocation21_spill] sm:$0xff] }
 0x1d5   : > { %v748_v35 = vsel %vm745_vm4, %v734_v60, %v742_v25  ;;  %v752_v9 = vsel %vm745_vm4, %v742_v25, %v734_v60  ;;  %v677_v45 = vsel %vm673_vm3, %v664_v58, %v672_v34  ;;  %v681_v60 = vsel %vm673_vm3, %v672_v34, %v664_v58 }
 0x1d6   : > { %v769_v62 = vmul.f32 %v2202_v10, %v752_v9  ;;  %v770_v31 = vmul.f32 %v2205_v7, %v748_v35  ;;  %v2466_v25 = vadd.f32 %v655_v15, %v583_v12  ;;  %v2468_v1 = vadd.f32 %v656_v49, %v584_v46  ;;  %v2705_v12 = vld [vmem:[#allocation12_spill] sm:$0xff]  ;;  %v2706_v46 = vld [vmem:[#allocation17_spill] sm:$0xff] }
 0x1d7   : > { %v699_v58 = vmul.f32 %v2177_v13, %v681_v60  ;;  %v700_v34 = vmul.f32 %v2180_v27, %v677_v45 }
 0x1d8   : > { %v744_v41 = vpop.permute.xlu1 %743  ;;  %v861_v38 = vpop.permute.xlu0 %860  ;;  %v797_v56 = vmul.f32 %v2703_v18, %v769_v62  ;;  %v798_v57 = vmul.f32 %v2703_v18, %v770_v31  ;;  %v2707_v62 = vld [vmem:[#allocation19_spill] sm:$0xff] }
 0x1d9   : > { %v749_v4 = vsel %vm745_vm4, %v2394_v6, %v744_v41  ;;  %v753_v43 = vsel %vm745_vm4, %v744_v41, %v2394_v6  ;;  %v867_v47 = vsel %vm864_vm5, %v2396_v28, %v861_v38  ;;  %v871_v13 = vsel %vm864_vm5, %v861_v38, %v2396_v28 }
 0x1da   : > { %v771_v24 = vmul.f32 %v2202_v10, %v753_v43  ;;  %v888_v9 = vmul.f32 %v2209_v52, %v867_v47  ;;  %v2710_v47 = vld [vmem:[#allocation20_spill] sm:$0xff] }
 0x1dc   : > { %v863_v44 = vpop.permute.xlu1 %862  ;;  %v933_v21 = vpop.permute.xlu0 %932  ;;  %v916_v45 = vmul.f32 %v2706_v46, %v888_v9 }
 0x1dd   : > { %v939_v8 = vsel %vm936_vm6, %v2400_v53, %v933_v21  ;;  %v943_v6 = vsel %vm936_vm6, %v933_v21, %v2400_v53  ;;  %v868_v28 = vsel %vm864_vm5, %v2398_v63, %v863_v44  ;;  %v872_v38 = vsel %vm864_vm5, %v863_v44, %v2398_v63  ;;  %v2708_v21 = vld [vmem:[#allocation18_spill] sm:$0xff] }
 0x1de   : > { %v889_v63 = vmul.f32 %v2212_v37, %v871_v13  ;;  %v960_v19 = vmul.f32 %v2218_v11, %v939_v8  ;;  %v961_v15 = vmul.f32 %v2240_v30, %v943_v6  ;;  %v890_v61 = vmul.f32 %v2209_v52, %v868_v28  ;;  %v2711_v8 = vld [vmem:[#allocation10_spill] sm:$0xff] }
 0x1df   : > { %v799_v52 = vmul.f32 %v2705_v12, %v771_v24  ;;  %v727_v6 = vmul.f32 %v2711_v8, %v699_v58  ;;  %v1149_v28 = vadd.f32 %v798_v57, %v726_v29  ;;  %v2715_v29 = vld [vmem:[#allocation16_spill] sm:$0xff] }
 0x1e0   : > { %v935_v27 = vpop.permute.xlu1 %934  ;;  %v1005_v40 = vpop.permute.xlu0 %1004  ;;  %v917_v60 = vmul.f32 %v2706_v46, %v889_v63  ;;  %v988_v31 = vmul.f32 %v2707_v62, %v960_v19  ;;  %v989_v44 = vmul.f32 %v2707_v62, %v961_v15  ;;  %v918_v55 = vmul.f32 %v2708_v21, %v890_v61 }
 0x1e1   : > { %v1011_v2 = vsel %vm1008_vm7, %v2404_v14, %v1005_v40  ;;  %v1015_v41 = vsel %vm1008_vm7, %v1005_v40, %v2404_v14  ;;  %v940_v53 = vsel %vm936_vm6, %v2402_v59, %v935_v27  ;;  %v944_v42 = vsel %vm936_vm6, %v935_v27, %v2402_v59 }
 0x1e2   : > { %v772_v14 = vmul.f32 %v2205_v7, %v749_v4  ;;  %v1032_v16 = vmul.f32 %v2247_v32, %v1011_v2  ;;  %v1033_v35 = vmul.f32 %v2250_v26, %v1015_v41  ;;  %v891_v59 = vmul.f32 %v2212_v37, %v872_v38  ;;  %v2709_v4 = vld [vmem:[#allocation22_spill] sm:$0xff]  ;;  %v2712_v38 = vld [vmem:[#allocation13_spill] sm:$0xff] }
 0x1e3   : > { %v962_v10 = vmul.f32 %v2218_v11, %v940_v53  ;;  %v963_v7 = vmul.f32 %v2240_v30, %v944_v42  ;;  %v728_v2 = vmul.f32 %v2711_v8, %v700_v34  ;;  %v1148_v41 = vadd.f32 %v797_v56, %v725_v33  ;;  %v2713_v42 = vld [vmem:[#allocation14_spill] sm:$0xff]  ;;  %v2714_v34 = vld [vmem:[#allocation15_spill] sm:$0xff] }
 0x1e4   : > { %v1007_v49 = vpop.permute.xlu1 %1006  ;;  %v1060_v39 = vmul.f32 %v2704_v23, %v1032_v16  ;;  %v1061_v22 = vmul.f32 %v2704_v23, %v1033_v35  ;;  %v800_v37 = vmul.f32 %v2705_v12, %v772_v14  ;;  %v1077_v40 = vpop.permute.xlu0 %1076  ;;  %v1156_v53 = vadd.f32 %v916_v45, %v2712_v38 }
 0x1e5   : > { %v1012_v5 = vsel %vm1008_vm7, %v2406_v17, %v1007_v49  ;;  %v1016_v54 = vsel %vm1008_vm7, %v1007_v49, %v2406_v17  ;;  %v919_v17 = vmul.f32 %v2708_v21, %v891_v59  ;;  %v1157_v24 = vadd.f32 %v917_v60, %v2713_v42  ;;  %v2717_v60 = vld [vmem:[#allocation25_spill] sm:$0xff] }
 0x1e6   : > { %v1034_v11 = vmul.f32 %v2247_v32, %v1012_v5  ;;  %v1035_v30 = vmul.f32 %v2250_v26, %v1016_v54  ;;  %v990_v32 = vmul.f32 %v2710_v47, %v962_v10  ;;  %v991_v26 = vmul.f32 %v2710_v47, %v963_v7 }
 0x1e7   : > { %v1164_v13 = vadd.f32 %v1060_v39, %v988_v31  ;;  %v1165_v27 = vadd.f32 %v1061_v22, %v989_v44  ;;  %v1150_v9 = vadd.f32 %v799_v52, %v727_v6  ;;  %v1151_v63 = vadd.f32 %v800_v37, %v728_v2  ;;  %v2716_v52 = vld [vmem:[#allocation24_spill] sm:$0xff]  ;;  %v1514_v2 = vld [vmem:[%s1695_s25] sm:$0xff] }
 0x1e8   : > { %v1062_v43 = vmul.f32 %v2709_v4, %v1034_v11  ;;  %v1063_v18 = vmul.f32 %v2709_v4, %v1035_v30  ;;  %v1079_v35 = vpop.permute.xlu1 %1078  ;;  %v1083_v19 = vsel %vm1080_vm8, %v2408_v3, %v1077_v40  ;;  %v1087_v58 = vsel %vm1080_vm8, %v1077_v40, %v2408_v3 }
 0x1e9   : > { %v1158_v33 = vadd.f32 %v918_v55, %v2714_v34  ;;  %v1159_v56 = vadd.f32 %v919_v17, %v2715_v29  ;;  %v1180_v57 = vadd.f32 %v1164_v13, %v1156_v53  ;;  %v1181_v15 = vadd.f32 %v1165_v27, %v1157_v24 }
 0x1ea   : > { %v1166_v14 = vadd.f32 %v1062_v43, %v990_v32  ;;  %v1167_v16 = vadd.f32 %v1063_v18, %v991_v26  ;;  %v1084_v49 = vsel %vm1080_vm8, %v2410_v0, %v1079_v35  ;;  %v1088_v61 = vsel %vm1080_vm8, %v1079_v35, %v2410_v0  ;;  %v316_v26 = vld [vmem:[%s2633_s5] sm:$0xff] }
 0x1eb   : > { %v1172_v59 = vadd.f32 %v1148_v41, %v2462_v20  ;;  %v1173_v10 = vadd.f32 %v1149_v28, %v2464_v48  ;;  %v1104_v3 = vmul.f32 %v2257_v50, %v1083_v19  ;;  %v1105_v7 = vmul.f32 %v2265_v36, %v1087_v58  ;;  %v1515_v28 = vld [vmem:[%s1695_s25 + $0x8] sm:$0xff]  ;;  %s1590_s25 = smov [#allocation2]  }
 0x1ec   : > { %v1182_v23 = vadd.f32 %v1166_v14, %v1158_v33  ;;  %v1183_v39 = vadd.f32 %v1167_v16, %v1159_v56  ;;  %v1174_v22 = vadd.f32 %v1150_v9, %v2466_v25  ;;  %v1175_v5 = vadd.f32 %v1151_v63, %v2468_v1  ;;  %s1520_s24 = sshll.u32 %s1590_s25, 4  ;;  %s1521_s24 = int_to_ptr.vmem [resolvable:$false] %s1520_s24 }
 0x1ed   : > { %v1106_v54 = vmul.f32 %v2257_v50, %v1084_v49  ;;  %v1107_v12 = vmul.f32 %v2265_v36, %v1088_v61  ;;  %v1188_v51 = vadd.f32 %v1180_v57, %v1172_v59  ;;  %v1189_v0 = vadd.f32 %v1181_v15, %v1173_v10  ;;  %s1522_s26 = scalar_lea.vmem %s1521_s24, 512  ;;  %p1523_p0 = scmp.lt.s32.totalorder %s2588_s19, %s1521_s24 }
 0x1ee   : > { %v1132_v20 = vmul.f32 %v2716_v52, %v1104_v3  ;;  %v1133_v48 = vmul.f32 %v2716_v52, %v1105_v7  ;;  %v1190_v37 = vadd.f32 %v1182_v23, %v1174_v22  ;;  %v1191_v11 = vadd.f32 %v1183_v39, %v1175_v5  ;;  %p1524_p1 = scmp.lt.s32.totalorder %s1522_s26, %s1516_s9 }
 0x1ef   : > { %v1134_v62 = vmul.f32 %v2717_v60, %v1106_v54  ;;  %v1135_v25 = vmul.f32 %v2717_v60, %v1107_v12 }
 0x1f0   : > { %v1196_v46 = vadd.f32 %v1188_v51, %v1132_v20  ;;  %v1197_v45 = vadd.f32 %v1189_v0, %v1133_v48  ;;  %p1525_p2 = por %p1524_p1, %p1523_p0 }
 0x1f1   : > { %v1198_v50 = vadd.f32 %v1190_v37, %v1134_v62  ;;  %v1199_v36 = vadd.f32 %v1191_v11, %v1135_v25 }
 0x1f2   : > { %p1526_p3 = pnand %p1525_p2, %p1519_p13 }
 0x1f5   : > { %v1213_v30 = vpop.permute.xlu0 %1212 }
 0x1f6   : > { %v1224_v1 = vadd.f32 %v1213_v30, %v1196_v46  ;;  %v1225_v31 = vadd.f32 %v1213_v30, %v1197_v45 }
 0x1f8   : > { %v1232_v17 = vmax.f32 %v1224_v1, 0.0  ;;  %v1233_v4 = vmax.f32 %v1225_v31, 0.0 }
 0x1f9   : > { %v1218_v44 = vpop.permute.xlu1 %1217  ;;  %v1239_v13 = vpop.permute.xlu0 %1238 }
 0x1fa   : > { %v1226_v21 = vadd.f32 %v1218_v44, %v1198_v50  ;;  %v1227_v55 = vadd.f32 %v1218_v44, %v1199_v36 }
 0x1fc   : > { %v1234_v43 = vmax.f32 %v1226_v21, 0.0  ;;  %v1235_v18 = vmax.f32 %v1227_v55, 0.0 }
 0x1fe   : > { %v1459_v47 = vpack.c.bf16 %v1235_v18, %v1233_v4  ;;  %v1461_v32 = vpack.c.bf16 %v1234_v43, %v1232_v17 }
 0x200   : > { %1460 = vmatprep.subr.bf16.mxu1 %v1459_v47 }
 0x201   : > { %1462 = vmatpush1.bf16.msra.mxu1 %v1461_v32 }
 0x204   : > { %1447 = vmatmul.mubr.msk.f32.vlgmr.msra.gmra.mrb[0].mxu1 %vm1241_vm9, %v316_v26 }
 0x2d7   : > { %v1311_v27 = vpop.f32.mrb[0].mxu1 }
 0x2d8   : > { %v1312_v40 = vadd.f32 %v1311_v27, %v1239_v13  ;;  %v1313_v8 = vpop.f32.mrb[1].mxu1 }
 0x2d9   : > { %v1314_v6 = vadd.f32 %v1313_v8, %v1239_v13 }
 0x2da   : > { %v1316_v41 = vadd.f32 %v1514_v2, %v1312_v40 }
 0x2db   : > { %v1317_v38 = vadd.f32 %v1515_v28, %v1314_v6 }
 0x2dc   : > { %v1318_v53 = vmax.f32 %v1316_v41, 0.0 }
 0x2dd   : > { %v1319_v42 = vmax.f32 %v1317_v38, 0.0 }
 0x2de   : > { %1320 = vst [vmem:[%s298_s18] sm:$0xff] %v1318_v53 }
 0x2df   : > { %1321 = vst [vmem:[%s298_s18 + $0x8] sm:$0xff] %v1319_v42 }
 0x2e0   : > { %1529 = shalt.err (!%p1526_p3)
}
 0x2e1   : > { %s1530_s10 = scalar_lea.hbm %s2586_s22, 256  ;;  %s1534_s17 = scalar_lea.hbm %s2636_s8, 512 }
 0x2e2   : > { %p1531_p4 = scmp.ne.s32.totalorder %s2586_s22, %s1530_s10  ;;  %p1535_p9 = scmp.lt.u32.totalorder %s2586_s22, %s2636_s8 }
 0x2e3   : > { %p1536_p10 = scmp.lt.u32.totalorder %s1534_s17, %s1530_s10  ;;  %p1538_p12 = scmp.lt.u32.totalorder %s1530_s10, %s2586_s22 }
 0x2e4   : > { %p1532_p7 = pnand %p1531_p4, %p1674_p5 }
 0x2e5   : > { %p1537_p11 = por %p1536_p10, %p1535_p9 }
 0x2e6   : > { %p1533_p8 = pneg %p1532_p7 }
 0x2e7   : > { %p1539_p13 = por %p1538_p12, %p1537_p11 }
 0x2e9   : > { %p1540_p0 = pnand %p1539_p13, %p1533_p8 }
 0x2eb   : > { %1543 = shalt.err (!%p1540_p0)
}
 0x2ec   : > { %1463 = dma.vmem_to_hbm [thread:$0]  (%p1674_p5), %s2588_s19, 256, %s2586_s22, %s1323_s23  }
 0x2ed PF: > { %p1469_p1 = scmp.ge.s32.totalorder %s1578_s30, 2  ;;  %s1349_s21 = sand.u32 1, %s1566_s27  }
 0x2ee   : > { %s1350_s9 = scalar_lea.sflag [#allocation3], %s1349_s21 }
 0x2ef   : > { %p1466_p2 = pnand %p1469_p1, %p1678_p6 }
 0x2f1   : > { %1561 = dma.done.wait (!%p1466_p2), %s1350_s9, 256  }
 0x2f2   : > { %1563 = vsyncadd (!%p1466_p2), %s1350_s9, 4294967040  ;;  %p18_p3 = scmp.ge.s32.totalorder %s1661_s11, 4   ;;  %s2718_s27 = smov %s1570_s28 }
 0x2f3   : > { %s2719_s28 = smov %s1574_s29  ;;  %s2720_s29 = smov %s1672_s14 }
 0x2f4   : > { %s2721_s30 = smov %s1661_s11  ;;  %20 = sbr.rel (!%p18_p3) target bundleno = 3 (0x3), region = 103 }
 0x2fb   :  { %1355 = vsyncpa [#allocation3], 1 }
 0x2fc   :  { %1357 = vsyncpa [#allocation3 + $0x1], 1 }

</bundles_post_ra>
